<compile_context>
chip_gen: v7x
topology: tpu7x:2x2x1
jax: 0.10.0
libtpu: 0.0.40
codegen_flags: <defaults>
</compile_context>

<pallas_src>
import math
from functools import partial

import jax
import jax.numpy as jnp
from jax.experimental import pallas as pl
from jax.experimental.pallas import tpu as pltpu


# Set to jnp.bfloat16 on v6e/v7x for ~2x MXU throughput (f32 accumulation is
# kept via preferred_element_type). Default f32 to match PyTorch numerics.
MATMUL_DTYPE = jnp.float32

_ROW_TILE_CANDIDATES = (512, 256, 128, 64, 32, 16, 8)


def _row_tile(n, cap=256):
    """Largest row tile (multiple of 8, <= cap) that divides n; else full n."""
    for t in _ROW_TILE_CANDIDATES:
        if t <= cap and n % t == 0:
            return t
    return n  # full extent is always a legal block shape


def _parallel(rank=1):
    return pltpu.CompilerParams(dimension_semantics=("parallel",) * rank)


# ----------------------------------------------------------------------------
# GELU (exact erf if Mosaic can lower it, tanh approximation otherwise)
# ----------------------------------------------------------------------------
_EXACT_GELU = None


def _erf_supported():
    def k(x_ref, o_ref):
        o_ref[...] = jax.lax.erf(x_ref[...])
    try:
        fn = pl.pallas_call(k, out_shape=jax.ShapeDtypeStruct((8, 128), jnp.float32))
        jax.jit(fn).lower(jax.ShapeDtypeStruct((8, 128), jnp.float32)).compile()
        return True
    except Exception:
        return False


def gelu_exact_supported():
    global _EXACT_GELU
    if _EXACT_GELU is None:
        _EXACT_GELU = _erf_supported()
    return _EXACT_GELU


def _gelu(x, exact):
    if exact:
        return 0.5 * x * (1.0 + jax.lax.erf(x * (2.0 ** -0.5)))
    # TODO(synk): tanh-approx fallback only if erf cannot be lowered by Mosaic.
    c = math.sqrt(2.0 / math.pi)
    return 0.5 * x * (1.0 + jnp.tanh(c * (x + 0.044715 * x * x * x)))


def _layernorm_f32(x, g, b):
    mean = jnp.mean(x, axis=-1, keepdims=True)
    var = jnp.mean(jnp.square(x - mean), axis=-1, keepdims=True)
    return (x - mean) * jax.lax.rsqrt(var + 1e-5) * g + b


# ----------------------------------------------------------------------------
# Kernel 1: fused LayerNorm + QKV projection (no bias), lane-dense output
# ----------------------------------------------------------------------------
def _ln_qkv_kernel(x_ref, g_ref, b_ref, w_ref, o_ref):
    xn = _layernorm_f32(x_ref[...].astype(jnp.float32), g_ref[...], b_ref[...])
    acc = jnp.dot(xn.astype(MATMUL_DTYPE), w_ref[...].astype(MATMUL_DTYPE),
                  preferred_element_type=jnp.float32)
    o_ref[...] = acc.astype(o_ref.dtype)


def ln_qkv(x2d, gamma, beta, wqkv):
    n, d = x2d.shape
    dout = wqkv.shape[1]
    tm = _row_tile(n)
    # TODO(synk): for large models (dim>=1024) tile the K/N dims of the weight
    # with a reduction grid axis + VMEM accumulator so it fits v7x's 64 MiB VMEM.
    return pl.pallas_call(
        _ln_qkv_kernel,
        out_shape=jax.ShapeDtypeStruct((n, dout), x2d.dtype),
        grid=(n // tm,),
        in_specs=[
            pl.BlockSpec((tm, d), lambda i: (i, 0)),
            pl.BlockSpec((1, d), lambda i: (0, 0)),
            pl.BlockSpec((1, d), lambda i: (0, 0)),
            pl.BlockSpec((d, dout), lambda i: (0, 0)),
        ],
        out_specs=pl.BlockSpec((tm, dout), lambda i: (i, 0)),
        compiler_params=_parallel(1),
    )(x2d, gamma.reshape(1, d), beta.reshape(1, d), wqkv)


# ----------------------------------------------------------------------------
# Kernel 2: linear attention, all heads of one batch element per grid step.
# Input is the fused (T, 3*H*E) QKV slab (no HBM transposes), output (T, H*E).
# ----------------------------------------------------------------------------
def _linear_attn_kernel(qkv_ref, o_ref, *, heads, d_head, scale):
    he = heads * d_head
    slab = qkv_ref[...].astype(jnp.float32)  # (T, 3*H*E)
    outs = []
    for h in range(heads):  # static unroll over heads; matmuls are per-head anyway
        off = h * d_head
        q = slab[:, off:off + d_head]
        k = slab[:, he + off:he + off + d_head]
        v = slab[:, 2 * he + off:2 * he + off + d_head]
        # softmax over feature dim for q
        q = jnp.exp(q - jnp.max(q, axis=-1, keepdims=True))
        q = q * pl.reciprocal(jnp.sum(q, axis=-1, keepdims=True), approx=True)
        # softmax over sequence dim for k
        k = jnp.exp(k - jnp.max(k, axis=0, keepdims=True))
        k = k * pl.reciprocal(jnp.sum(k, axis=0, keepdims=True), approx=True)
        q = q * scale
        # context = einsum('nd,ne->de', k, v); attn = einsum('nd,de->ne', q, context)
        context = jax.lax.dot_general(k, v, (((0,), (0,)), ((), ())),
                                      preferred_element_type=jnp.float32)
        outs.append(jnp.dot(q, context, preferred_element_type=jnp.float32))
    # single lane-dense store of all heads
    o_ref[...] = jnp.concatenate(outs, axis=-1).astype(o_ref.dtype)


def linear_attention(qkv3, heads, d_head):
    # qkv3: (B, T, 3*H*E)  ->  (B, T, H*E)
    B, T, three_he = qkv3.shape
    he = heads * d_head
    kern = partial(_linear_attn_kernel, heads=heads, d_head=d_head,
                   scale=d_head ** -0.5)
    return pl.pallas_call(
        kern,
        out_shape=jax.ShapeDtypeStruct((B, T, he), qkv3.dtype),
        grid=(B,),
        in_specs=[pl.BlockSpec((None, T, three_he), lambda b: (b, 0, 0))],
        out_specs=pl.BlockSpec((None, T, he), lambda b: (b, 0, 0)),
        compiler_params=_parallel(1),
    )(qkv3)


# ----------------------------------------------------------------------------
# Kernel 3: output projection + bias + fused residual add
# ----------------------------------------------------------------------------
def _out_residual_kernel(a_ref, w_ref, b_ref, x_ref, o_ref):
    acc = jnp.dot(a_ref[...].astype(MATMUL_DTYPE), w_ref[...].astype(MATMUL_DTYPE),
                  preferred_element_type=jnp.float32)
    o_ref[...] = (x_ref[...].astype(jnp.float32) + acc + b_ref[...]).astype(o_ref.dtype)


def out_proj_residual(attn2d, wo, bo, x2d):
    n, he = attn2d.shape
    d = wo.shape[1]
    tm = _row_tile(n)
    return pl.pallas_call(
        _out_residual_kernel,
        out_shape=jax.ShapeDtypeStruct((n, d), x2d.dtype),
        grid=(n // tm,),
        in_specs=[
            pl.BlockSpec((tm, he), lambda i: (i, 0)),
            pl.BlockSpec((he, d), lambda i: (0, 0)),
            pl.BlockSpec((1, d), lambda i: (0, 0)),
            pl.BlockSpec((tm, d), lambda i: (i, 0)),
        ],
        out_specs=pl.BlockSpec((tm, d), lambda i: (i, 0)),
        compiler_params=_parallel(1),
    )(attn2d, wo, bo.reshape(1, d), x2d)


# ----------------------------------------------------------------------------
# Kernel 4: fused LayerNorm + FFN (GELU) + residual add
# ----------------------------------------------------------------------------
def _ln_ffn_residual_kernel(x_ref, g_ref, bln_ref, w1_ref, b1_ref, w2_ref, b2_ref,
                            o_ref, *, exact_gelu):
    x = x_ref[...].astype(jnp.float32)
    xn = _layernorm_f32(x, g_ref[...], bln_ref[...])
    h = jnp.dot(xn.astype(MATMUL_DTYPE), w1_ref[...].astype(MATMUL_DTYPE),
                preferred_element_type=jnp.float32) + b1_ref[...]
    h = _gelu(h, exact_gelu)
    y = jnp.dot(h.astype(MATMUL_DTYPE), w2_ref[...].astype(MATMUL_DTYPE),
                preferred_element_type=jnp.float32) + b2_ref[...]
    o_ref[...] = (x + y).astype(o_ref.dtype)


def ln_ffn_residual(x2d, gamma, beta, w1, b1, w2, b2):
    n, d = x2d.shape
    dh = w1.shape[1]
    tm = _row_tile(n)
    exact = gelu_exact_supported()
    # TODO(synk): for large dim*mult, K/N-tile w1/w2 with a reduction grid axis
    # + VMEM accumulator instead of keeping both weights fully resident (v7x VMEM).
    return pl.pallas_call(
        partial(_ln_ffn_residual_kernel, exact_gelu=exact),
        out_shape=jax.ShapeDtypeStruct((n, d), x2d.dtype),
        grid=(n // tm,),
        in_specs=[
            pl.BlockSpec((tm, d), lambda i: (i, 0)),
            pl.BlockSpec((1, d), lambda i: (0, 0)),
            pl.BlockSpec((1, d), lambda i: (0, 0)),
            pl.BlockSpec((d, dh), lambda i: (0, 0)),
            pl.BlockSpec((1, dh), lambda i: (0, 0)),
            pl.BlockSpec((dh, d), lambda i: (0, 0)),
            pl.BlockSpec((1, d), lambda i: (0, 0)),
        ],
        out_specs=pl.BlockSpec((tm, d), lambda i: (i, 0)),
        compiler_params=_parallel(1),
    )(x2d, gamma.reshape(1, d), beta.reshape(1, d),
      w1, b1.reshape(1, dh), w2, b2.reshape(1, d))


# ----------------------------------------------------------------------------
# Chunk module equivalent (the spec): split along `dim`, apply fn, concatenate.
# ----------------------------------------------------------------------------
def chunk_apply(fn, x, chunks, dim):
    if chunks == 1:
        return fn(x)
    # NOTE: assumes x.shape[dim] is divisible by `chunks` (as in upstream usage);
    # torch.chunk would allow uneven trailing chunks.
    pieces = jnp.split(x, chunks, axis=dim)
    return jnp.concatenate([fn(c) for c in pieces], axis=dim)


# ----------------------------------------------------------------------------
# model assembly (glue in plain JAX; no HBM transposes anywhere)
# ----------------------------------------------------------------------------
def init_params(key, dim, depth, heads, d_head, mult=4):
    layers = []
    he = heads * d_head
    for _ in range(depth):
        key, *ks = jax.random.split(key, 9)
        s = 0.05
        wq = s * jax.random.normal(ks[0], (dim, he), jnp.float32)
        wk = s * jax.random.normal(ks[1], (dim, he), jnp.float32)
        wv = s * jax.random.normal(ks[2], (dim, he), jnp.float32)
        layers.append(dict(
            ln1_g=jnp.ones((dim,), jnp.float32),
            ln1_b=jnp.zeros((dim,), jnp.float32),
            wqkv=jnp.concatenate([wq, wk, wv], axis=1),   # fused QKV weight, no bias
            wo=s * jax.random.normal(ks[3], (he, dim), jnp.float32),
            bo=0.01 * jax.random.normal(ks[4], (dim,), jnp.float32),
            ln2_g=jnp.ones((dim,), jnp.float32),
            ln2_b=jnp.zeros((dim,), jnp.float32),
            w1=s * jax.random.normal(ks[5], (dim, dim * mult), jnp.float32),
            b1=0.01 * jax.random.normal(ks[6], (dim * mult,), jnp.float32),
            w2=s * jax.random.normal(ks[7], (dim * mult, dim), jnp.float32),
            b2=jnp.zeros((dim,), jnp.float32),
        ))
    return layers


def transformer_forward(x, layers, *, heads, d_head, ff_chunks=1):
    b, t, d = x.shape
    he = heads * d_head
    for p in layers:
        # ---- attention block: x = x + to_out(linear_attn(to_qkv(LN(x)))) ----
        qkv = ln_qkv(x.reshape(b * t, d), p['ln1_g'], p['ln1_b'], p['wqkv'])
        attn = linear_attention(qkv.reshape(b, t, 3 * he), heads, d_head)
        x = out_proj_residual(attn.reshape(b * t, he), p['wo'], p['bo'],
                              x.reshape(b * t, d)).reshape(b, t, d)

        # ---- feedforward block: x = x + Chunk(ff_chunks, FF)(LN(x)) ----
        def ff_block(xc, p=p):
            out = ln_ffn_residual(xc.reshape(-1, d), p['ln2_g'], p['ln2_b'],
                                  p['w1'], p['b1'], p['w2'], p['b2'])
            return out.reshape(xc.shape)
        x = chunk_apply(ff_block, x, ff_chunks, dim=1)
    return x


if __name__ == "__main__":
    batch, seq, dim, depth, heads = 2, 16, 32, 2, 4
    d_head = dim // heads  # dim_head=None -> dim // heads

    key = jax.random.PRNGKey(0)
    kx, kp = jax.random.split(key)
    x = jax.random.normal(kx, (batch, seq, dim), jnp.float32)
    params = init_params(kp, dim, depth, heads, d_head)

    # resolve the erf/GELU probe eagerly (before jit tracing)
    gelu_exact_supported()

    fwd = jax.jit(partial(transformer_forward, heads=heads, d_head=d_head, ff_chunks=1))
    y = fwd(x, params)
    jax.block_until_ready(y)
    assert y.shape == (batch, seq, dim)
    assert bool(jnp.all(jnp.isfinite(y)))

    # Chunk semantics check: chunking the (position-wise) FF along the sequence
    # dim must not change the result.
    fwd2 = jax.jit(partial(transformer_forward, heads=heads, d_head=d_head, ff_chunks=2))
    y2 = fwd2(x, params)
    jax.block_until_ready(y2)
    assert bool(jnp.allclose(y, y2, rtol=1e-4, atol=1e-4))

    print("KERNEL_OK")
</pallas_src>

<mosaic_0001>
module attributes {stable_mosaic.version = 11 : i64} {
  func.func @_out_residual_kernel(%arg0: i32, %arg1: memref<32x32xf32, #tpu.memory_space<vmem>>, %arg2: memref<32x32xf32, #tpu.memory_space<vmem>>, %arg3: memref<1x32xf32, #tpu.memory_space<vmem>>, %arg4: memref<32x32xf32, #tpu.memory_space<vmem>>, %arg5: memref<32x32xf32, #tpu.memory_space<vmem>>) attributes {dimension_semantics = [#tpu.dimension_semantics<parallel>], iteration_bounds = array<i64: 1>, scalar_prefetch = 0 : i64, scratch_operands = 0 : i64, tpu.core_type = #tpu.core_type<tc>, window_params = [{transform_indices = @transform_0, window_bounds = array<i64: 32, 32>}, {pipeline_mode = #tpu.pipeline_mode<synchronous>, transform_indices = @transform_1, window_bounds = array<i64: 32, 32>}, {pipeline_mode = #tpu.pipeline_mode<synchronous>, transform_indices = @transform_2, window_bounds = array<i64: 1, 32>}, {transform_indices = @transform_3, window_bounds = array<i64: 32, 32>}, {transform_indices = @transform_4, window_bounds = array<i64: 32, 32>}]} {
    %c0 = arith.constant 0 : index
    %c0_0 = arith.constant 0 : index
    %0 = vector.load %arg1[%c0, %c0_0] : memref<32x32xf32, #tpu.memory_space<vmem>>, vector<32x32xf32>
    %c0_1 = arith.constant 0 : index
    %c0_2 = arith.constant 0 : index
    %1 = vector.load %arg2[%c0_1, %c0_2] : memref<32x32xf32, #tpu.memory_space<vmem>>, vector<32x32xf32>
    %cst = arith.constant dense<0.000000e+00> : vector<32x32xf32>
    %2 = tpu.matmul %0, %1, %cst {dimension_numbers = #tpu.dot_dimension_numbers<[1], [0], [0], [1], [0, 0, 1, 1], [], []>} : vector<32x32xf32>, vector<32x32xf32>, vector<32x32xf32> -> vector<32x32xf32>
    %c0_3 = arith.constant 0 : index
    %c0_4 = arith.constant 0 : index
    %3 = vector.load %arg4[%c0_3, %c0_4] : memref<32x32xf32, #tpu.memory_space<vmem>>, vector<32x32xf32>
    %4 = arith.addf %3, %2 : vector<32x32xf32>
    %c0_5 = arith.constant 0 : index
    %c0_6 = arith.constant 0 : index
    %5 = vector.load %arg3[%c0_5, %c0_6] : memref<1x32xf32, #tpu.memory_space<vmem>>, vector<1x32xf32>
    %6 = vector.broadcast %5 : vector<1x32xf32> to vector<32x32xf32>
    %7 = arith.addf %4, %6 : vector<32x32xf32>
    %c0_7 = arith.constant 0 : index
    %c0_8 = arith.constant 0 : index
    %8 = vector.load %arg5[%c0_7, %c0_8] : memref<32x32xf32, #tpu.memory_space<vmem>>, vector<32x32xf32>
    tpu.vector_store %arg5[%c0_7, %c0_8], %7 {strides = array<i32>} : memref<32x32xf32, #tpu.memory_space<vmem>>, vector<32x32xf32>,
    return
  }
  func.func @transform_0(%arg0: i32) -> (i32, i32) {
    %c0_i32 = arith.constant 0 : i32
    %c0_i32_0 = arith.constant 0 : i32
    return %arg0, %c0_i32 : i32, i32
  }
  func.func @transform_1(%arg0: i32) -> (i32, i32) {
    %c0_i32 = arith.constant 0 : i32
    %c0_i32_0 = arith.constant 0 : i32
    %c0_i32_1 = arith.constant 0 : i32
    return %c0_i32, %c0_i32_0 : i32, i32
  }
  func.func @transform_2(%arg0: i32) -> (i32, i32) {
    %c0_i32 = arith.constant 0 : i32
    %c0_i32_0 = arith.constant 0 : i32
    %c0_i32_1 = arith.constant 0 : i32
    return %c0_i32, %c0_i32_0 : i32, i32
  }
  func.func @transform_3(%arg0: i32) -> (i32, i32) {
    %c0_i32 = arith.constant 0 : i32
    %c0_i32_0 = arith.constant 0 : i32
    return %arg0, %c0_i32 : i32, i32
  }
  func.func @transform_4(%arg0: i32) -> (i32, i32) {
    %c0_i32 = arith.constant 0 : i32
    %c0_i32_0 = arith.constant 0 : i32
    return %arg0, %c0_i32 : i32, i32
  }
}

module attributes {stable_mosaic.version = 11 : i64} {
  func.func @_ln_qkv_kernel(%arg0: i32, %arg1: memref<32x32xf32, #tpu.memory_space<vmem>>, %arg2: memref<1x32xf32, #tpu.memory_space<vmem>>, %arg3: memref<1x32xf32, #tpu.memory_space<vmem>>, %arg4: memref<32x96xf32, #tpu.memory_space<vmem>>, %arg5: memref<32x96xf32, #tpu.memory_space<vmem>>) attributes {dimension_semantics = [#tpu.dimension_semantics<parallel>], iteration_bounds = array<i64: 1>, scalar_prefetch = 0 : i64, scratch_operands = 0 : i64, tpu.core_type = #tpu.core_type<tc>, window_params = [{transform_indices = @transform_0, window_bounds = array<i64: 32, 32>}, {pipeline_mode = #tpu.pipeline_mode<synchronous>, transform_indices = @transform_1, window_bounds = array<i64: 1, 32>}, {pipeline_mode = #tpu.pipeline_mode<synchronous>, transform_indices = @transform_2, window_bounds = array<i64: 1, 32>}, {pipeline_mode = #tpu.pipeline_mode<synchronous>, transform_indices = @transform_3, window_bounds = array<i64: 32, 96>}, {transform_indices = @transform_4, window_bounds = array<i64: 32, 96>}]} {
    %c0 = arith.constant 0 : index
    %c0_0 = arith.constant 0 : index
    %0 = vector.load %arg1[%c0, %c0_0] : memref<32x32xf32, #tpu.memory_space<vmem>>, vector<32x32xf32>
    %c0_1 = arith.constant 0 : index
    %c0_2 = arith.constant 0 : index
    %1 = vector.load %arg2[%c0_1, %c0_2] : memref<1x32xf32, #tpu.memory_space<vmem>>, vector<1x32xf32>
    %c0_3 = arith.constant 0 : index
    %c0_4 = arith.constant 0 : index
    %2 = vector.load %arg3[%c0_3, %c0_4] : memref<1x32xf32, #tpu.memory_space<vmem>>, vector<1x32xf32>
    %cst = arith.constant dense<0.000000e+00> : vector<32xf32>
    %3 = vector.multi_reduction <add>, %0, %cst [1] : vector<32x32xf32> to vector<32xf32>
    %4 = vector.shape_cast %3 : vector<32xf32> to vector<32x1xf32>
    %cst_5 = arith.constant 3.200000e+01 : f32
    %5 = vector.broadcast %cst_5 : f32 to vector<32x1xf32>
    %6 = arith.divf %4, %5 : vector<32x1xf32>
    %7 = vector.broadcast %6 : vector<32x1xf32> to vector<32x32xf32>
    %8 = arith.subf %0, %7 : vector<32x32xf32>
    %9 = arith.mulf %8, %8 : vector<32x32xf32>
    %cst_6 = arith.constant dense<0.000000e+00> : vector<32xf32>
    %10 = vector.multi_reduction <add>, %9, %cst_6 [1] : vector<32x32xf32> to vector<32xf32>
    %11 = vector.shape_cast %10 : vector<32xf32> to vector<32x1xf32>
    %cst_7 = arith.constant 3.200000e+01 : f32
    %12 = vector.broadcast %cst_7 : f32 to vector<32x1xf32>
    %13 = arith.divf %11, %12 : vector<32x1xf32>
    %14 = vector.broadcast %6 : vector<32x1xf32> to vector<32x32xf32>
    %15 = arith.subf %0, %14 : vector<32x32xf32>
    %cst_8 = arith.constant 9.99999974E-6 : f32
    %16 = vector.broadcast %cst_8 : f32 to vector<32x1xf32>
    %17 = arith.addf %13, %16 : vector<32x1xf32>
    %18 = math.rsqrt %17 : vector<32x1xf32>
    %19 = vector.broadcast %18 : vector<32x1xf32> to vector<32x32xf32>
    %20 = arith.mulf %15, %19 : vector<32x32xf32>
    %21 = vector.broadcast %1 : vector<1x32xf32> to vector<32x32xf32>
    %22 = arith.mulf %20, %21 : vector<32x32xf32>
    %23 = vector.broadcast %2 : vector<1x32xf32> to vector<32x32xf32>
    %24 = arith.addf %22, %23 : vector<32x32xf32>
    %c0_9 = arith.constant 0 : index
    %c0_10 = arith.constant 0 : index
    %25 = vector.load %arg4[%c0_9, %c0_10] : memref<32x96xf32, #tpu.memory_space<vmem>>, vector<32x96xf32>
    %cst_11 = arith.constant dense<0.000000e+00> : vector<32x96xf32>
    %26 = tpu.matmul %24, %25, %cst_11 {dimension_numbers = #tpu.dot_dimension_numbers<[1], [0], [0], [1], [0, 0, 1, 1], [], []>} : vector<32x32xf32>, vector<32x96xf32>, vector<32x96xf32> -> vector<32x96xf32>
    %c0_12 = arith.constant 0 : index
    %c0_13 = arith.constant 0 : index
    %27 = vector.load %arg5[%c0_12, %c0_13] : memref<32x96xf32, #tpu.memory_space<vmem>>, vector<32x96xf32>
    tpu.vector_store %arg5[%c0_12, %c0_13], %26 {strides = array<i32>} : memref<32x96xf32, #tpu.memory_space<vmem>>, vector<32x96xf32>,
    return
  }
  func.func @transform_0(%arg0: i32) -> (i32, i32) {
    %c0_i32 = arith.constant 0 : i32
    %c0_i32_0 = arith.constant 0 : i32
    return %arg0, %c0_i32 : i32, i32
  }
  func.func @transform_1(%arg0: i32) -> (i32, i32) {
    %c0_i32 = arith.constant 0 : i32
    %c0_i32_0 = arith.constant 0 : i32
    %c0_i32_1 = arith.constant 0 : i32
    return %c0_i32, %c0_i32_0 : i32, i32
  }
  func.func @transform_2(%arg0: i32) -> (i32, i32) {
    %c0_i32 = arith.constant 0 : i32
    %c0_i32_0 = arith.constant 0 : i32
    %c0_i32_1 = arith.constant 0 : i32
    return %c0_i32, %c0_i32_0 : i32, i32
  }
  func.func @transform_3(%arg0: i32) -> (i32, i32) {
    %c0_i32 = arith.constant 0 : i32
    %c0_i32_0 = arith.constant 0 : i32
    %c0_i32_1 = arith.constant 0 : i32
    return %c0_i32, %c0_i32_0 : i32, i32
  }
  func.func @transform_4(%arg0: i32) -> (i32, i32) {
    %c0_i32 = arith.constant 0 : i32
    %c0_i32_0 = arith.constant 0 : i32
    return %arg0, %c0_i32 : i32, i32
  }
}

module attributes {stable_mosaic.version = 11 : i64} {
  func.func @_linear_attn_kernel(%arg0: i32, %arg1: memref<1x16x96xf32, #tpu.memory_space<vmem>>, %arg2: memref<1x16x32xf32, #tpu.memory_space<vmem>>) attributes {dimension_semantics = [#tpu.dimension_semantics<parallel>], iteration_bounds = array<i64: 2>, scalar_prefetch = 0 : i64, scratch_operands = 0 : i64, tpu.core_type = #tpu.core_type<tc>, window_params = [{transform_indices = @transform_0, window_bounds = array<i64: 1, 16, 96>}, {transform_indices = @transform_1, window_bounds = array<i64: 1, 16, 32>}]} {
    %c0 = arith.constant 0 : index
    %c0_0 = arith.constant 0 : index
    %c0_1 = arith.constant 0 : index
    %0 = vector.load %arg1[%c0, %c0_0, %c0_1] : memref<1x16x96xf32, #tpu.memory_space<vmem>>, vector<1x16x96xf32>
    %1 = vector.shape_cast %0 : vector<1x16x96xf32> to vector<16x96xf32>
    %2 = vector.extract_strided_slice %1 {offsets = [0, 0], sizes = [16, 8], strides = [1, 1]} : vector<16x96xf32> to vector<16x8xf32>
    %3 = vector.extract_strided_slice %1 {offsets = [0, 32], sizes = [16, 8], strides = [1, 1]} : vector<16x96xf32> to vector<16x8xf32>
    %4 = vector.extract_strided_slice %1 {offsets = [0, 64], sizes = [16, 8], strides = [1, 1]} : vector<16x96xf32> to vector<16x8xf32>
    %cst = arith.constant dense<0xFF800000> : vector<16xf32>
    %5 = vector.multi_reduction <maximumf>, %2, %cst [1] : vector<16x8xf32> to vector<16xf32>
    %6 = vector.shape_cast %5 : vector<16xf32> to vector<16x1xf32>
    %7 = vector.broadcast %6 : vector<16x1xf32> to vector<16x8xf32>
    %8 = arith.subf %2, %7 : vector<16x8xf32>
    %9 = math.exp %8 : vector<16x8xf32>
    %cst_2 = arith.constant dense<0.000000e+00> : vector<16xf32>
    %10 = vector.multi_reduction <add>, %9, %cst_2 [1] : vector<16x8xf32> to vector<16xf32>
    %11 = vector.shape_cast %10 : vector<16xf32> to vector<16x1xf32>
    %12 = tpu.reciprocal %11 {approx = true} : vector<16x1xf32> -> vector<16x1xf32>
    %13 = vector.broadcast %12 : vector<16x1xf32> to vector<16x8xf32>
    %14 = arith.mulf %9, %13 : vector<16x8xf32>
    %cst_3 = arith.constant dense<0xFF800000> : vector<8xf32>
    %15 = vector.multi_reduction <maximumf>, %3, %cst_3 [0] : vector<16x8xf32> to vector<8xf32>
    %16 = vector.shape_cast %15 : vector<8xf32> to vector<1x8xf32>
    %17 = vector.broadcast %16 : vector<1x8xf32> to vector<16x8xf32>
    %18 = arith.subf %3, %17 : vector<16x8xf32>
    %19 = math.exp %18 : vector<16x8xf32>
    %cst_4 = arith.constant dense<0.000000e+00> : vector<8xf32>
    %20 = vector.multi_reduction <add>, %19, %cst_4 [0] : vector<16x8xf32> to vector<8xf32>
    %21 = vector.shape_cast %20 : vector<8xf32> to vector<1x8xf32>
    %22 = tpu.reciprocal %21 {approx = true} : vector<1x8xf32> -> vector<1x8xf32>
    %23 = vector.broadcast %22 : vector<1x8xf32> to vector<16x8xf32>
    %24 = arith.mulf %19, %23 : vector<16x8xf32>
    %cst_5 = arith.constant 0.353553385 : f32
    %25 = vector.broadcast %cst_5 : f32 to vector<16x8xf32>
    %26 = arith.mulf %14, %25 : vector<16x8xf32>
    %cst_6 = arith.constant dense<0.000000e+00> : vector<8x8xf32>
    %27 = tpu.matmul %24, %4, %cst_6 {dimension_numbers = #tpu.dot_dimension_numbers<[0], [0], [1], [1], [0, 1, 1, 1], [], []>} : vector<16x8xf32>, vector<16x8xf32>, vector<8x8xf32> -> vector<8x8xf32>
    %cst_7 = arith.constant dense<0.000000e+00> : vector<16x8xf32>
    %28 = tpu.matmul %26, %27, %cst_7 {dimension_numbers = #tpu.dot_dimension_numbers<[1], [0], [0], [1], [0, 0, 1, 1], [], []>} : vector<16x8xf32>, vector<8x8xf32>, vector<16x8xf32> -> vector<16x8xf32>
    %29 = vector.extract_strided_slice %1 {offsets = [0, 8], sizes = [16, 8], strides = [1, 1]} : vector<16x96xf32> to vector<16x8xf32>
    %30 = vector.extract_strided_slice %1 {offsets = [0, 40], sizes = [16, 8], strides = [1, 1]} : vector<16x96xf32> to vector<16x8xf32>
    %31 = vector.extract_strided_slice %1 {offsets = [0, 72], sizes = [16, 8], strides = [1, 1]} : vector<16x96xf32> to vector<16x8xf32>
    %cst_8 = arith.constant dense<0xFF800000> : vector<16xf32>
    %32 = vector.multi_reduction <maximumf>, %29, %cst_8 [1] : vector<16x8xf32> to vector<16xf32>
    %33 = vector.shape_cast %32 : vector<16xf32> to vector<16x1xf32>
    %34 = vector.broadcast %33 : vector<16x1xf32> to vector<16x8xf32>
    %35 = arith.subf %29, %34 : vector<16x8xf32>
    %36 = math.exp %35 : vector<16x8xf32>
    %cst_9 = arith.constant dense<0.000000e+00> : vector<16xf32>
    %37 = vector.multi_reduction <add>, %36, %cst_9 [1] : vector<16x8xf32> to vector<16xf32>
    %38 = vector.shape_cast %37 : vector<16xf32> to vector<16x1xf32>
    %39 = tpu.reciprocal %38 {approx = true} : vector<16x1xf32> -> vector<16x1xf32>
    %40 = vector.broadcast %39 : vector<16x1xf32> to vector<16x8xf32>
    %41 = arith.mulf %36, %40 : vector<16x8xf32>
    %cst_10 = arith.constant dense<0xFF800000> : vector<8xf32>
    %42 = vector.multi_reduction <maximumf>, %30, %cst_10 [0] : vector<16x8xf32> to vector<8xf32>
    %43 = vector.shape_cast %42 : vector<8xf32> to vector<1x8xf32>
    %44 = vector.broadcast %43 : vector<1x8xf32> to vector<16x8xf32>
    %45 = arith.subf %30, %44 : vector<16x8xf32>
    %46 = math.exp %45 : vector<16x8xf32>
    %cst_11 = arith.constant dense<0.000000e+00> : vector<8xf32>
    %47 = vector.multi_reduction <add>, %46, %cst_11 [0] : vector<16x8xf32> to vector<8xf32>
    %48 = vector.shape_cast %47 : vector<8xf32> to vector<1x8xf32>
    %49 = tpu.reciprocal %48 {approx = true} : vector<1x8xf32> -> vector<1x8xf32>
    %50 = vector.broadcast %49 : vector<1x8xf32> to vector<16x8xf32>
    %51 = arith.mulf %46, %50 : vector<16x8xf32>
    %cst_12 = arith.constant 0.353553385 : f32
    %52 = vector.broadcast %cst_12 : f32 to vector<16x8xf32>
    %53 = arith.mulf %41, %52 : vector<16x8xf32>
    %cst_13 = arith.constant dense<0.000000e+00> : vector<8x8xf32>
    %54 = tpu.matmul %51, %31, %cst_13 {dimension_numbers = #tpu.dot_dimension_numbers<[0], [0], [1], [1], [0, 1, 1, 1], [], []>} : vector<16x8xf32>, vector<16x8xf32>, vector<8x8xf32> -> vector<8x8xf32>
    %cst_14 = arith.constant dense<0.000000e+00> : vector<16x8xf32>
    %55 = tpu.matmul %53, %54, %cst_14 {dimension_numbers = #tpu.dot_dimension_numbers<[1], [0], [0], [1], [0, 0, 1, 1], [], []>} : vector<16x8xf32>, vector<8x8xf32>, vector<16x8xf32> -> vector<16x8xf32>
    %56 = vector.extract_strided_slice %1 {offsets = [0, 16], sizes = [16, 8], strides = [1, 1]} : vector<16x96xf32> to vector<16x8xf32>
    %57 = vector.extract_strided_slice %1 {offsets = [0, 48], sizes = [16, 8], strides = [1, 1]} : vector<16x96xf32> to vector<16x8xf32>
    %58 = vector.extract_strided_slice %1 {offsets = [0, 80], sizes = [16, 8], strides = [1, 1]} : vector<16x96xf32> to vector<16x8xf32>
    %cst_15 = arith.constant dense<0xFF800000> : vector<16xf32>
    %59 = vector.multi_reduction <maximumf>, %56, %cst_15 [1] : vector<16x8xf32> to vector<16xf32>
    %60 = vector.shape_cast %59 : vector<16xf32> to vector<16x1xf32>
    %61 = vector.broadcast %60 : vector<16x1xf32> to vector<16x8xf32>
    %62 = arith.subf %56, %61 : vector<16x8xf32>
    %63 = math.exp %62 : vector<16x8xf32>
    %cst_16 = arith.constant dense<0.000000e+00> : vector<16xf32>
    %64 = vector.multi_reduction <add>, %63, %cst_16 [1] : vector<16x8xf32> to vector<16xf32>
    %65 = vector.shape_cast %64 : vector<16xf32> to vector<16x1xf32>
    %66 = tpu.reciprocal %65 {approx = true} : vector<16x1xf32> -> vector<16x1xf32>
    %67 = vector.broadcast %66 : vector<16x1xf32> to vector<16x8xf32>
    %68 = arith.mulf %63, %67 : vector<16x8xf32>
    %cst_17 = arith.constant dense<0xFF800000> : vector<8xf32>
    %69 = vector.multi_reduction <maximumf>, %57, %cst_17 [0] : vector<16x8xf32> to vector<8xf32>
    %70 = vector.shape_cast %69 : vector<8xf32> to vector<1x8xf32>
    %71 = vector.broadcast %70 : vector<1x8xf32> to vector<16x8xf32>
    %72 = arith.subf %57, %71 : vector<16x8xf32>
    %73 = math.exp %72 : vector<16x8xf32>
    %cst_18 = arith.constant dense<0.000000e+00> : vector<8xf32>
    %74 = vector.multi_reduction <add>, %73, %cst_18 [0] : vector<16x8xf32> to vector<8xf32>
    %75 = vector.shape_cast %74 : vector<8xf32> to vector<1x8xf32>
    %76 = tpu.reciprocal %75 {approx = true} : vector<1x8xf32> -> vector<1x8xf32>
    %77 = vector.broadcast %76 : vector<1x8xf32> to vector<16x8xf32>
    %78 = arith.mulf %73, %77 : vector<16x8xf32>
    %cst_19 = arith.constant 0.353553385 : f32
    %79 = vector.broadcast %cst_19 : f32 to vector<16x8xf32>
    %80 = arith.mulf %68, %79 : vector<16x8xf32>
    %cst_20 = arith.constant dense<0.000000e+00> : vector<8x8xf32>
    %81 = tpu.matmul %78, %58, %cst_20 {dimension_numbers = #tpu.dot_dimension_numbers<[0], [0], [1], [1], [0, 1, 1, 1], [], []>} : vector<16x8xf32>, vector<16x8xf32>, vector<8x8xf32> -> vector<8x8xf32>
    %cst_21 = arith.constant dense<0.000000e+00> : vector<16x8xf32>
    %82 = tpu.matmul %80, %81, %cst_21 {dimension_numbers = #tpu.dot_dimension_numbers<[1], [0], [0], [1], [0, 0, 1, 1], [], []>} : vector<16x8xf32>, vector<8x8xf32>, vector<16x8xf32> -> vector<16x8xf32>
    %83 = vector.extract_strided_slice %1 {offsets = [0, 24], sizes = [16, 8], strides = [1, 1]} : vector<16x96xf32> to vector<16x8xf32>
    %84 = vector.extract_strided_slice %1 {offsets = [0, 56], sizes = [16, 8], strides = [1, 1]} : vector<16x96xf32> to vector<16x8xf32>
    %85 = vector.extract_strided_slice %1 {offsets = [0, 88], sizes = [16, 8], strides = [1, 1]} : vector<16x96xf32> to vector<16x8xf32>
    %cst_22 = arith.constant dense<0xFF800000> : vector<16xf32>
    %86 = vector.multi_reduction <maximumf>, %83, %cst_22 [1] : vector<16x8xf32> to vector<16xf32>
    %87 = vector.shape_cast %86 : vector<16xf32> to vector<16x1xf32>
    %88 = vector.broadcast %87 : vector<16x1xf32> to vector<16x8xf32>
    %89 = arith.subf %83, %88 : vector<16x8xf32>
    %90 = math.exp %89 : vector<16x8xf32>
    %cst_23 = arith.constant dense<0.000000e+00> : vector<16xf32>
    %91 = vector.multi_reduction <add>, %90, %cst_23 [1] : vector<16x8xf32> to vector<16xf32>
    %92 = vector.shape_cast %91 : vector<16xf32> to vector<16x1xf32>
    %93 = tpu.reciprocal %92 {approx = true} : vector<16x1xf32> -> vector<16x1xf32>
    %94 = vector.broadcast %93 : vector<16x1xf32> to vector<16x8xf32>
    %95 = arith.mulf %90, %94 : vector<16x8xf32>
    %cst_24 = arith.constant dense<0xFF800000> : vector<8xf32>
    %96 = vector.multi_reduction <maximumf>, %84, %cst_24 [0] : vector<16x8xf32> to vector<8xf32>
    %97 = vector.shape_cast %96 : vector<8xf32> to vector<1x8xf32>
    %98 = vector.broadcast %97 : vector<1x8xf32> to vector<16x8xf32>
    %99 = arith.subf %84, %98 : vector<16x8xf32>
    %100 = math.exp %99 : vector<16x8xf32>
    %cst_25 = arith.constant dense<0.000000e+00> : vector<8xf32>
    %101 = vector.multi_reduction <add>, %100, %cst_25 [0] : vector<16x8xf32> to vector<8xf32>
    %102 = vector.shape_cast %101 : vector<8xf32> to vector<1x8xf32>
    %103 = tpu.reciprocal %102 {approx = true} : vector<1x8xf32> -> vector<1x8xf32>
    %104 = vector.broadcast %103 : vector<1x8xf32> to vector<16x8xf32>
    %105 = arith.mulf %100, %104 : vector<16x8xf32>
    %cst_26 = arith.constant 0.353553385 : f32
    %106 = vector.broadcast %cst_26 : f32 to vector<16x8xf32>
    %107 = arith.mulf %95, %106 : vector<16x8xf32>
    %cst_27 = arith.constant dense<0.000000e+00> : vector<8x8xf32>
    %108 = tpu.matmul %105, %85, %cst_27 {dimension_numbers = #tpu.dot_dimension_numbers<[0], [0], [1], [1], [0, 1, 1, 1], [], []>} : vector<16x8xf32>, vector<16x8xf32>, vector<8x8xf32> -> vector<8x8xf32>
    %cst_28 = arith.constant dense<0.000000e+00> : vector<16x8xf32>
    %109 = tpu.matmul %107, %108, %cst_28 {dimension_numbers = #tpu.dot_dimension_numbers<[1], [0], [0], [1], [0, 0, 1, 1], [], []>} : vector<16x8xf32>, vector<8x8xf32>, vector<16x8xf32> -> vector<16x8xf32>
    %110 = tpu.concatenate %28, %55, %82, %109 in 1 : vector<16x8xf32>, vector<16x8xf32>, vector<16x8xf32>, vector<16x8xf32> -> vector<16x32xf32>
    %c0_29 = arith.constant 0 : index
    %c0_30 = arith.constant 0 : index
    %c0_31 = arith.constant 0 : index
    %111 = vector.load %arg2[%c0_29, %c0_30, %c0_31] : memref<1x16x32xf32, #tpu.memory_space<vmem>>, vector<1x16x32xf32>
    %112 = vector.shape_cast %111 : vector<1x16x32xf32> to vector<16x32xf32>
    %113 = vector.shape_cast %110 : vector<16x32xf32> to vector<1x16x32xf32>
    tpu.vector_store %arg2[%c0_29, %c0_30, %c0_31], %113 {strides = array<i32>} : memref<1x16x32xf32, #tpu.memory_space<vmem>>, vector<1x16x32xf32>,
    return
  }
  func.func @transform_0(%arg0: i32) -> (i32, i32, i32) {
    %c0_i32 = arith.constant 0 : i32
    %c0_i32_0 = arith.constant 0 : i32
    %c0_i32_1 = arith.constant 0 : i32
    return %arg0, %c0_i32, %c0_i32_0 : i32, i32, i32
  }
  func.func @transform_1(%arg0: i32) -> (i32, i32, i32) {
    %c0_i32 = arith.constant 0 : i32
    %c0_i32_0 = arith.constant 0 : i32
    %c0_i32_1 = arith.constant 0 : i32
    return %arg0, %c0_i32, %c0_i32_0 : i32, i32, i32
  }
}

module attributes {stable_mosaic.version = 11 : i64} {
  func.func @_ln_ffn_residual_kernel(%arg0: i32, %arg1: memref<32x32xf32, #tpu.memory_space<vmem>>, %arg2: memref<1x32xf32, #tpu.memory_space<vmem>>, %arg3: memref<1x32xf32, #tpu.memory_space<vmem>>, %arg4: memref<32x128xf32, #tpu.memory_space<vmem>>, %arg5: memref<1x128xf32, #tpu.memory_space<vmem>>, %arg6: memref<128x32xf32, #tpu.memory_space<vmem>>, %arg7: memref<1x32xf32, #tpu.memory_space<vmem>>, %arg8: memref<32x32xf32, #tpu.memory_space<vmem>>) attributes {dimension_semantics = [#tpu.dimension_semantics<parallel>], iteration_bounds = array<i64: 1>, scalar_prefetch = 0 : i64, scratch_operands = 0 : i64, tpu.core_type = #tpu.core_type<tc>, window_params = [{transform_indices = @transform_0, window_bounds = array<i64: 32, 32>}, {pipeline_mode = #tpu.pipeline_mode<synchronous>, transform_indices = @transform_1, window_bounds = array<i64: 1, 32>}, {pipeline_mode = #tpu.pipeline_mode<synchronous>, transform_indices = @transform_2, window_bounds = array<i64: 1, 32>}, {pipeline_mode = #tpu.pipeline_mode<synchronous>, transform_indices = @transform_3, window_bounds = array<i64: 32, 128>}, {pipeline_mode = #tpu.pipeline_mode<synchronous>, transform_indices = @transform_4, window_bounds = array<i64: 1, 128>}, {pipeline_mode = #tpu.pipeline_mode<synchronous>, transform_indices = @transform_5, window_bounds = array<i64: 128, 32>}, {pipeline_mode = #tpu.pipeline_mode<synchronous>, transform_indices = @transform_6, window_bounds = array<i64: 1, 32>}, {transform_indices = @transform_7, window_bounds = array<i64: 32, 32>}]} {
    %c0 = arith.constant 0 : index
    %c0_0 = arith.constant 0 : index
    %0 = vector.load %arg1[%c0, %c0_0] : memref<32x32xf32, #tpu.memory_space<vmem>>, vector<32x32xf32>
    %c0_1 = arith.constant 0 : index
    %c0_2 = arith.constant 0 : index
    %1 = vector.load %arg2[%c0_1, %c0_2] : memref<1x32xf32, #tpu.memory_space<vmem>>, vector<1x32xf32>
    %c0_3 = arith.constant 0 : index
    %c0_4 = arith.constant 0 : index
    %2 = vector.load %arg3[%c0_3, %c0_4] : memref<1x32xf32, #tpu.memory_space<vmem>>, vector<1x32xf32>
    %cst = arith.constant dense<0.000000e+00> : vector<32xf32>
    %3 = vector.multi_reduction <add>, %0, %cst [1] : vector<32x32xf32> to vector<32xf32>
    %4 = vector.shape_cast %3 : vector<32xf32> to vector<32x1xf32>
    %cst_5 = arith.constant 3.200000e+01 : f32
    %5 = vector.broadcast %cst_5 : f32 to vector<32x1xf32>
    %6 = arith.divf %4, %5 : vector<32x1xf32>
    %7 = vector.broadcast %6 : vector<32x1xf32> to vector<32x32xf32>
    %8 = arith.subf %0, %7 : vector<32x32xf32>
    %9 = arith.mulf %8, %8 : vector<32x32xf32>
    %cst_6 = arith.constant dense<0.000000e+00> : vector<32xf32>
    %10 = vector.multi_reduction <add>, %9, %cst_6 [1] : vector<32x32xf32> to vector<32xf32>
    %11 = vector.shape_cast %10 : vector<32xf32> to vector<32x1xf32>
    %cst_7 = arith.constant 3.200000e+01 : f32
    %12 = vector.broadcast %cst_7 : f32 to vector<32x1xf32>
    %13 = arith.divf %11, %12 : vector<32x1xf32>
    %14 = vector.broadcast %6 : vector<32x1xf32> to vector<32x32xf32>
    %15 = arith.subf %0, %14 : vector<32x32xf32>
    %cst_8 = arith.constant 9.99999974E-6 : f32
    %16 = vector.broadcast %cst_8 : f32 to vector<32x1xf32>
    %17 = arith.addf %13, %16 : vector<32x1xf32>
    %18 = math.rsqrt %17 : vector<32x1xf32>
    %19 = vector.broadcast %18 : vector<32x1xf32> to vector<32x32xf32>
    %20 = arith.mulf %15, %19 : vector<32x32xf32>
    %21 = vector.broadcast %1 : vector<1x32xf32> to vector<32x32xf32>
    %22 = arith.mulf %20, %21 : vector<32x32xf32>
    %23 = vector.broadcast %2 : vector<1x32xf32> to vector<32x32xf32>
    %24 = arith.addf %22, %23 : vector<32x32xf32>
    %c0_9 = arith.constant 0 : index
    %c0_10 = arith.constant 0 : index
    %25 = vector.load %arg4[%c0_9, %c0_10] : memref<32x128xf32, #tpu.memory_space<vmem>>, vector<32x128xf32>
    %cst_11 = arith.constant dense<0.000000e+00> : vector<32x128xf32>
    %26 = tpu.matmul %24, %25, %cst_11 {dimension_numbers = #tpu.dot_dimension_numbers<[1], [0], [0], [1], [0, 0, 1, 1], [], []>} : vector<32x32xf32>, vector<32x128xf32>, vector<32x128xf32> -> vector<32x128xf32>
    %c0_12 = arith.constant 0 : index
    %c0_13 = arith.constant 0 : index
    %27 = vector.load %arg5[%c0_12, %c0_13] : memref<1x128xf32, #tpu.memory_space<vmem>>, vector<1x128xf32>
    %28 = vector.broadcast %27 : vector<1x128xf32> to vector<32x128xf32>
    %29 = arith.addf %26, %28 : vector<32x128xf32>
    %cst_14 = arith.constant 5.000000e-01 : f32
    %30 = vector.broadcast %cst_14 : f32 to vector<32x128xf32>
    %31 = arith.mulf %30, %29 : vector<32x128xf32>
    %cst_15 = arith.constant 4.471500e-02 : f32
    %32 = vector.broadcast %cst_15 : f32 to vector<32x128xf32>
    %33 = arith.mulf %32, %29 : vector<32x128xf32>
    %34 = arith.mulf %33, %29 : vector<32x128xf32>
    %35 = arith.mulf %34, %29 : vector<32x128xf32>
    %36 = arith.addf %29, %35 : vector<32x128xf32>
    %cst_16 = arith.constant 0.797884583 : f32
    %37 = vector.broadcast %cst_16 : f32 to vector<32x128xf32>
    %38 = arith.mulf %37, %36 : vector<32x128xf32>
    %39 = math.tanh %38 : vector<32x128xf32>
    %cst_17 = arith.constant 1.000000e+00 : f32
    %40 = vector.broadcast %cst_17 : f32 to vector<32x128xf32>
    %41 = arith.addf %40, %39 : vector<32x128xf32>
    %42 = arith.mulf %31, %41 : vector<32x128xf32>
    %c0_18 = arith.constant 0 : index
    %c0_19 = arith.constant 0 : index
    %43 = vector.load %arg6[%c0_18, %c0_19] : memref<128x32xf32, #tpu.memory_space<vmem>>, vector<128x32xf32>
    %cst_20 = arith.constant dense<0.000000e+00> : vector<32x32xf32>
    %44 = tpu.matmul %42, %43, %cst_20 {dimension_numbers = #tpu.dot_dimension_numbers<[1], [0], [0], [1], [0, 0, 1, 1], [], []>} : vector<32x128xf32>, vector<128x32xf32>, vector<32x32xf32> -> vector<32x32xf32>
    %c0_21 = arith.constant 0 : index
    %c0_22 = arith.constant 0 : index
    %45 = vector.load %arg7[%c0_21, %c0_22] : memref<1x32xf32, #tpu.memory_space<vmem>>, vector<1x32xf32>
    %46 = vector.broadcast %45 : vector<1x32xf32> to vector<32x32xf32>
    %47 = arith.addf %44, %46 : vector<32x32xf32>
    %48 = arith.addf %0, %47 : vector<32x32xf32>
    %c0_23 = arith.constant 0 : index
    %c0_24 = arith.constant 0 : index
    %49 = vector.load %arg8[%c0_23, %c0_24] : memref<32x32xf32, #tpu.memory_space<vmem>>, vector<32x32xf32>
    tpu.vector_store %arg8[%c0_23, %c0_24], %48 {strides = array<i32>} : memref<32x32xf32, #tpu.memory_space<vmem>>, vector<32x32xf32>,
    return
  }
  func.func @transform_0(%arg0: i32) -> (i32, i32) {
    %c0_i32 = arith.constant 0 : i32
    %c0_i32_0 = arith.constant 0 : i32
    return %arg0, %c0_i32 : i32, i32
  }
  func.func @transform_1(%arg0: i32) -> (i32, i32) {
    %c0_i32 = arith.constant 0 : i32
    %c0_i32_0 = arith.constant 0 : i32
    %c0_i32_1 = arith.constant 0 : i32
    return %c0_i32, %c0_i32_0 : i32, i32
  }
  func.func @transform_2(%arg0: i32) -> (i32, i32) {
    %c0_i32 = arith.constant 0 : i32
    %c0_i32_0 = arith.constant 0 : i32
    %c0_i32_1 = arith.constant 0 : i32
    return %c0_i32, %c0_i32_0 : i32, i32
  }
  func.func @transform_3(%arg0: i32) -> (i32, i32) {
    %c0_i32 = arith.constant 0 : i32
    %c0_i32_0 = arith.constant 0 : i32
    %c0_i32_1 = arith.constant 0 : i32
    return %c0_i32, %c0_i32_0 : i32, i32
  }
  func.func @transform_4(%arg0: i32) -> (i32, i32) {
    %c0_i32 = arith.constant 0 : i32
    %c0_i32_0 = arith.constant 0 : i32
    %c0_i32_1 = arith.constant 0 : i32
    return %c0_i32, %c0_i32_0 : i32, i32
  }
  func.func @transform_5(%arg0: i32) -> (i32, i32) {
    %c0_i32 = arith.constant 0 : i32
    %c0_i32_0 = arith.constant 0 : i32
    %c0_i32_1 = arith.constant 0 : i32
    return %c0_i32, %c0_i32_0 : i32, i32
  }
  func.func @transform_6(%arg0: i32) -> (i32, i32) {
    %c0_i32 = arith.constant 0 : i32
    %c0_i32_0 = arith.constant 0 : i32
    %c0_i32_1 = arith.constant 0 : i32
    return %c0_i32, %c0_i32_0 : i32, i32
  }
  func.func @transform_7(%arg0: i32) -> (i32, i32) {
    %c0_i32 = arith.constant 0 : i32
    %c0_i32_0 = arith.constant 0 : i32
    return %arg0, %c0_i32 : i32, i32
  }
}

module attributes {stable_mosaic.version = 11 : i64} {
  func.func @_ln_ffn_residual_kernel(%arg0: i32, %arg1: memref<32x32xf32, #tpu.memory_space<vmem>>, %arg2: memref<1x32xf32, #tpu.memory_space<vmem>>, %arg3: memref<1x32xf32, #tpu.memory_space<vmem>>, %arg4: memref<32x128xf32, #tpu.memory_space<vmem>>, %arg5: memref<1x128xf32, #tpu.memory_space<vmem>>, %arg6: memref<128x32xf32, #tpu.memory_space<vmem>>, %arg7: memref<1x32xf32, #tpu.memory_space<vmem>>, %arg8: memref<32x32xf32, #tpu.memory_space<vmem>>) attributes {dimension_semantics = [#tpu.dimension_semantics<parallel>], iteration_bounds = array<i64: 1>, scalar_prefetch = 0 : i64, scratch_operands = 0 : i64, tpu.core_type = #tpu.core_type<tc>, window_params = [{transform_indices = @transform_0, window_bounds = array<i64: 32, 32>}, {pipeline_mode = #tpu.pipeline_mode<synchronous>, transform_indices = @transform_1, window_bounds = array<i64: 1, 32>}, {pipeline_mode = #tpu.pipeline_mode<synchronous>, transform_indices = @transform_2, window_bounds = array<i64: 1, 32>}, {pipeline_mode = #tpu.pipeline_mode<synchronous>, transform_indices = @transform_3, window_bounds = array<i64: 32, 128>}, {pipeline_mode = #tpu.pipeline_mode<synchronous>, transform_indices = @transform_4, window_bounds = array<i64: 1, 128>}, {pipeline_mode = #tpu.pipeline_mode<synchronous>, transform_indices = @transform_5, window_bounds = array<i64: 128, 32>}, {pipeline_mode = #tpu.pipeline_mode<synchronous>, transform_indices = @transform_6, window_bounds = array<i64: 1, 32>}, {transform_indices = @transform_7, window_bounds = array<i64: 32, 32>}]} {
    %c0 = arith.constant 0 : index
    %c0_0 = arith.constant 0 : index
    %0 = vector.load %arg1[%c0, %c0_0] : memref<32x32xf32, #tpu.memory_space<vmem>>, vector<32x32xf32>
    %c0_1 = arith.constant 0 : index
    %c0_2 = arith.constant 0 : index
    %1 = vector.load %arg2[%c0_1, %c0_2] : memref<1x32xf32, #tpu.memory_space<vmem>>, vector<1x32xf32>
    %c0_3 = arith.constant 0 : index
    %c0_4 = arith.constant 0 : index
    %2 = vector.load %arg3[%c0_3, %c0_4] : memref<1x32xf32, #tpu.memory_space<vmem>>, vector<1x32xf32>
    %cst = arith.constant dense<0.000000e+00> : vector<32xf32>
    %3 = vector.multi_reduction <add>, %0, %cst [1] : vector<32x32xf32> to vector<32xf32>
    %4 = vector.shape_cast %3 : vector<32xf32> to vector<32x1xf32>
    %cst_5 = arith.constant 3.200000e+01 : f32
    %5 = vector.broadcast %cst_5 : f32 to vector<32x1xf32>
    %6 = arith.divf %4, %5 : vector<32x1xf32>
    %7 = vector.broadcast %6 : vector<32x1xf32> to vector<32x32xf32>
    %8 = arith.subf %0, %7 : vector<32x32xf32>
    %9 = arith.mulf %8, %8 : vector<32x32xf32>
    %cst_6 = arith.constant dense<0.000000e+00> : vector<32xf32>
    %10 = vector.multi_reduction <add>, %9, %cst_6 [1] : vector<32x32xf32> to vector<32xf32>
    %11 = vector.shape_cast %10 : vector<32xf32> to vector<32x1xf32>
    %cst_7 = arith.constant 3.200000e+01 : f32
    %12 = vector.broadcast %cst_7 : f32 to vector<32x1xf32>
    %13 = arith.divf %11, %12 : vector<32x1xf32>
    %14 = vector.broadcast %6 : vector<32x1xf32> to vector<32x32xf32>
    %15 = arith.subf %0, %14 : vector<32x32xf32>
    %cst_8 = arith.constant 9.99999974E-6 : f32
    %16 = vector.broadcast %cst_8 : f32 to vector<32x1xf32>
    %17 = arith.addf %13, %16 : vector<32x1xf32>
    %18 = math.rsqrt %17 : vector<32x1xf32>
    %19 = vector.broadcast %18 : vector<32x1xf32> to vector<32x32xf32>
    %20 = arith.mulf %15, %19 : vector<32x32xf32>
    %21 = vector.broadcast %1 : vector<1x32xf32> to vector<32x32xf32>
    %22 = arith.mulf %20, %21 : vector<32x32xf32>
    %23 = vector.broadcast %2 : vector<1x32xf32> to vector<32x32xf32>
    %24 = arith.addf %22, %23 : vector<32x32xf32>
    %c0_9 = arith.constant 0 : index
    %c0_10 = arith.constant 0 : index
    %25 = vector.load %arg4[%c0_9, %c0_10] : memref<32x128xf32, #tpu.memory_space<vmem>>, vector<32x128xf32>
    %cst_11 = arith.constant dense<0.000000e+00> : vector<32x128xf32>
    %26 = tpu.matmul %24, %25, %cst_11 {dimension_numbers = #tpu.dot_dimension_numbers<[1], [0], [0], [1], [0, 0, 1, 1], [], []>} : vector<32x32xf32>, vector<32x128xf32>, vector<32x128xf32> -> vector<32x128xf32>
    %c0_12 = arith.constant 0 : index
    %c0_13 = arith.constant 0 : index
    %27 = vector.load %arg5[%c0_12, %c0_13] : memref<1x128xf32, #tpu.memory_space<vmem>>, vector<1x128xf32>
    %28 = vector.broadcast %27 : vector<1x128xf32> to vector<32x128xf32>
    %29 = arith.addf %26, %28 : vector<32x128xf32>
    %cst_14 = arith.constant 5.000000e-01 : f32
    %30 = vector.broadcast %cst_14 : f32 to vector<32x128xf32>
    %31 = arith.mulf %30, %29 : vector<32x128xf32>
    %cst_15 = arith.constant 4.471500e-02 : f32
    %32 = vector.broadcast %cst_15 : f32 to vector<32x128xf32>
    %33 = arith.mulf %32, %29 : vector<32x128xf32>
    %34 = arith.mulf %33, %29 : vector<32x128xf32>
    %35 = arith.mulf %34, %29 : vector<32x128xf32>
    %36 = arith.addf %29, %35 : vector<32x128xf32>
    %cst_16 = arith.constant 0.797884583 : f32
    %37 = vector.broadcast %cst_16 : f32 to vector<32x128xf32>
    %38 = arith.mulf %37, %36 : vector<32x128xf32>
    %39 = math.tanh %38 : vector<32x128xf32>
    %cst_17 = arith.constant 1.000000e+00 : f32
    %40 = vector.broadcast %cst_17 : f32 to vector<32x128xf32>
    %41 = arith.addf %40, %39 : vector<32x128xf32>
    %42 = arith.mulf %31, %41 : vector<32x128xf32>
    %c0_18 = arith.constant 0 : index
    %c0_19 = arith.constant 0 : index
    %43 = vector.load %arg6[%c0_18, %c0_19] : memref<128x32xf32, #tpu.memory_space<vmem>>, vector<128x32xf32>
    %cst_20 = arith.constant dense<0.000000e+00> : vector<32x32xf32>
    %44 = tpu.matmul %42, %43, %cst_20 {dimension_numbers = #tpu.dot_dimension_numbers<[1], [0], [0], [1], [0, 0, 1, 1], [], []>} : vector<32x128xf32>, vector<128x32xf32>, vector<32x32xf32> -> vector<32x32xf32>
    %c0_21 = arith.constant 0 : index
    %c0_22 = arith.constant 0 : index
    %45 = vector.load %arg7[%c0_21, %c0_22] : memref<1x32xf32, #tpu.memory_space<vmem>>, vector<1x32xf32>
    %46 = vector.broadcast %45 : vector<1x32xf32> to vector<32x32xf32>
    %47 = arith.addf %44, %46 : vector<32x32xf32>
    %48 = arith.addf %0, %47 : vector<32x32xf32>
    %c0_23 = arith.constant 0 : index
    %c0_24 = arith.constant 0 : index
    %49 = vector.load %arg8[%c0_23, %c0_24] : memref<32x32xf32, #tpu.memory_space<vmem>>, vector<32x32xf32>
    tpu.vector_store %arg8[%c0_23, %c0_24], %48 {strides = array<i32>} : memref<32x32xf32, #tpu.memory_space<vmem>>, vector<32x32xf32>,
    return
  }
  func.func @transform_0(%arg0: i32) -> (i32, i32) {
    %c0_i32 = arith.constant 0 : i32
    %c0_i32_0 = arith.constant 0 : i32
    return %arg0, %c0_i32 : i32, i32
  }
  func.func @transform_1(%arg0: i32) -> (i32, i32) {
    %c0_i32 = arith.constant 0 : i32
    %c0_i32_0 = arith.constant 0 : i32
    %c0_i32_1 = arith.constant 0 : i32
    return %c0_i32, %c0_i32_0 : i32, i32
  }
  func.func @transform_2(%arg0: i32) -> (i32, i32) {
    %c0_i32 = arith.constant 0 : i32
    %c0_i32_0 = arith.constant 0 : i32
    %c0_i32_1 = arith.constant 0 : i32
    return %c0_i32, %c0_i32_0 : i32, i32
  }
  func.func @transform_3(%arg0: i32) -> (i32, i32) {
    %c0_i32 = arith.constant 0 : i32
    %c0_i32_0 = arith.constant 0 : i32
    %c0_i32_1 = arith.constant 0 : i32
    return %c0_i32, %c0_i32_0 : i32, i32
  }
  func.func @transform_4(%arg0: i32) -> (i32, i32) {
    %c0_i32 = arith.constant 0 : i32
    %c0_i32_0 = arith.constant 0 : i32
    %c0_i32_1 = arith.constant 0 : i32
    return %c0_i32, %c0_i32_0 : i32, i32
  }
  func.func @transform_5(%arg0: i32) -> (i32, i32) {
    %c0_i32 = arith.constant 0 : i32
    %c0_i32_0 = arith.constant 0 : i32
    %c0_i32_1 = arith.constant 0 : i32
    return %c0_i32, %c0_i32_0 : i32, i32
  }
  func.func @transform_6(%arg0: i32) -> (i32, i32) {
    %c0_i32 = arith.constant 0 : i32
    %c0_i32_0 = arith.constant 0 : i32
    %c0_i32_1 = arith.constant 0 : i32
    return %c0_i32, %c0_i32_0 : i32, i32
  }
  func.func @transform_7(%arg0: i32) -> (i32, i32) {
    %c0_i32 = arith.constant 0 : i32
    %c0_i32_0 = arith.constant 0 : i32
    return %arg0, %c0_i32 : i32, i32
  }
}

</mosaic_0001>

<bundles_post_ra>
// kernel: transformer_forward.8
= control target key start
LH: loop header
LB: loop body
LE: loop exit
PB: predicated region body
PF: predicated region fallthrough
CT: control target
= control target key end

     0   :  { %vm23_vm0 = vcmask 261120   ;;  %vm198_vm1 = vcmask 785408   ;;  %s334_s0 = inlined_call_operand.vmem [shape: f32[32,32], index: 0, kind: input, shape index: {}]   ;;  %s335_s3 = inlined_call_operand.vmem [shape: f32[32,96], index: 3, kind: input, shape index: {}]   ;;  %s336_s1 = inlined_call_operand.vmem [shape: f32[1,32], index: 1, kind: input, shape index: {}]   ;;  %s337_s2 = inlined_call_operand.vmem [shape: f32[1,32], index: 2, kind: input, shape index: {}]   ;;  %s338_s4 = inlined_call_operand.vmem [shape: f32[32,96], index: 4, kind: output, shape index: {}]  }
   0x1   :  { %v17_v0 = vld [vmem:[%s334_s0] sm:$0xff]  ;;  %v18_v1 = vld [vmem:[%s334_s0 + $0x8] sm:$0xff]  ;;  %v19_v2 = vld [vmem:[%s334_s0 + $0x10] sm:$0xff] }
   0x2   :  { %v24_v3 = vsel %vm23_vm0, %v17_v0, 0.0  ;;  %v27_v4 = vsel %vm23_vm0, %v18_v1, 0.0  ;;  %v20_v5 = vld [vmem:[%s334_s0 + $0x18] sm:$0xff]  ;;  %v30_v6 = vsel %vm23_vm0, %v19_v2, 0.0  ;;  %v97_v28 = vld [vmem:[%s335_s3] sm:$0xff]  ;;  %v98_v29 = vld [vmem:[%s335_s3 + $0x8] sm:$0xff] }
   0x3   :  { %25 = vadd.xlane.f32.xlu0 %v24_v3  ;;  %28 = vadd.xlane.f32.xlu1 %v27_v4  ;;  %v33_v7 = vsel %vm23_vm0, %v20_v5, 0.0  ;;  %v99_v30 = vld [vmem:[%s335_s3 + $0x10] sm:$0xff]  ;;  %v235_v31 = vpack.c.bf16 %v98_v29, %v97_v28  ;;  %v100_v32 = vld [vmem:[%s335_s3 + $0x18] sm:$0xff]  ;;  %v207_v47 = vld [vmem:[%s336_s1] ss:$0 sm:$0xff] }
   0x4   :  { %v239_v33 = vpack.c.bf16 %v100_v32, %v99_v30  ;;  %v208_v49 = vld [vmem:[%s337_s2] ss:$0 sm:$0xff] }
   0x5   :  { %236 = vmatprep.subr.bf16.mxu0 %v235_v31  ;;  %243 = vmatprep.subr.bf16.mxu1 %v235_v31 }
   0x6   :  { %238 = vmatpush3.bf16.msra.mxu0 %v235_v31  ;;  %245 = vmatpush3.bf16.msra.mxu1 %v235_v31 }
   0x7   :  { %31 = vadd.xlane.f32.xlu0 %v30_v6  ;;  %34 = vadd.xlane.f32.xlu1 %v33_v7 }
   0x8   :  { %240 = vmatprep.subr.bf16.mxu0 %v239_v33  ;;  %244 = vmatprep.subr.bf16.mxu1 %v239_v33 }
   0xa   :  { %242 = vmatpush3.bf16.msra.mxu0 %v239_v33  ;;  %246 = vmatpush3.bf16.msra.mxu1 %v239_v33 }
  0x90   :  { %v26_v8 = vpop.xlane.xlu0 %25  ;;  %v29_v9 = vpop.xlane.xlu1 %28 }
  0x91   :  { %v37_v10 = vmul.f32 0.03125, %v26_v8  ;;  %v38_v11 = vmul.f32 0.03125, %v29_v9 }
  0x93   :  { %v41_v12 = vsub.f32 %v17_v0, %v37_v10  ;;  %v42_v13 = vsub.f32 %v18_v1, %v38_v11 }
  0x94   :  { %v32_v14 = vpop.xlane.xlu0 %31  ;;  %v35_v15 = vpop.xlane.xlu1 %34 }
  0x95   :  { %v39_v16 = vmul.f32 0.03125, %v32_v14  ;;  %v40_v17 = vmul.f32 0.03125, %v35_v15  ;;  %v45_v18 = vmul.f32 %v41_v12, %v41_v12  ;;  %v46_v19 = vmul.f32 %v42_v13, %v42_v13 }
  0x97   :  { %v43_v20 = vsub.f32 %v19_v2, %v39_v16  ;;  %v44_v21 = vsub.f32 %v20_v5, %v40_v17  ;;  %v49_v22 = vsel %vm23_vm0, %v45_v18, 0.0  ;;  %v52_v23 = vsel %vm23_vm0, %v46_v19, 0.0 }
  0x98   :  { %50 = vadd.xlane.f32.xlu0 %v49_v22 }
  0x99   :  { %v47_v24 = vmul.f32 %v43_v20, %v43_v20  ;;  %v48_v25 = vmul.f32 %v44_v21, %v44_v21 }
  0x9b   :  { %v55_v26 = vsel %vm23_vm0, %v47_v24, 0.0  ;;  %v58_v27 = vsel %vm23_vm0, %v48_v25, 0.0 }
  0x9c   :  { %53 = vadd.xlane.f32.xlu0 %v52_v23  ;;  %56 = vadd.xlane.f32.xlu1 %v55_v26 }
  0xa0   :  { %59 = vadd.xlane.f32.xlu1 %v58_v27 }
 0x125   :  { %v51_v34 = vpop.xlane.xlu0 %50 }
 0x126   :  { %v61_v35 = vmul.f32 0.03125, %v51_v34 }
 0x128   :  { %v65_v36 = vadd.f32 1e-05, %v61_v35 }
 0x129   :  { %v57_v37 = vpop.xlane.xlu1 %56  ;;  %v54_v38 = vpop.xlane.xlu0 %53 }
 0x12a   :  { %247 = vrsqrt.f32 %v65_v36  ;;  %v63_v39 = vmul.f32 0.03125, %v57_v37  ;;  %v62_v40 = vmul.f32 0.03125, %v54_v38 }
 0x12c   :  { %v67_v41 = vadd.f32 1e-05, %v63_v39  ;;  %v66_v42 = vadd.f32 1e-05, %v62_v40 }
 0x12d   :  { %v60_v43 = vpop.xlane.xlu1 %59 }
 0x12e   :  { %249 = vrsqrt.f32 %v67_v41  ;;  %v64_v44 = vmul.f32 0.03125, %v60_v43 }
 0x12f   :  { %251 = vrsqrt.f32 %v66_v42 }
 0x130   :  { %v68_v45 = vadd.f32 1e-05, %v64_v44 }
 0x132   :  { %253 = vrsqrt.f32 %v68_v45 }
 0x134   :  { %v248_v46 = vpop.eup %247 }
 0x135   :  { %v73_v48 = vmul.f32 %v248_v46, %v41_v12 }
 0x137   :  { %v83_v50 = vmul.f32 %v207_v47, %v73_v48 }
 0x138   :  { %v250_v51 = vpop.eup %249 }
 0x139   :  { %v252_v52 = vpop.eup %251  ;;  %v93_v53 = vadd.f32 %v208_v49, %v83_v50  ;;  %v75_v54 = vmul.f32 %v250_v51, %v43_v20 }
 0x13a   :  { %v74_v55 = vmul.f32 %v252_v52, %v42_v13 }
 0x13b   :  { %229 = vmatprep.mubr.msk.f32.mxu0 %vm23_vm0, %v93_v53  ;;  %v85_v56 = vmul.f32 %v207_v47, %v75_v54 }
 0x13c   :  { %v254_v57 = vpop.eup %253  ;;  %v84_v58 = vmul.f32 %v207_v47, %v74_v55 }
 0x13d   :  { %v95_v59 = vadd.f32 %v208_v49, %v85_v56  ;;  %v76_v60 = vmul.f32 %v254_v57, %v44_v21 }
 0x13e   :  { %v94_v61 = vadd.f32 %v208_v49, %v84_v58 }
 0x13f   :  { %232 = vmatprep.mubr.msk.f32.mxu1 %vm23_vm0, %v95_v59  ;;  %v86_v62 = vmul.f32 %v207_v47, %v76_v60 }
 0x140   :  { %230 = vmatmul.mubr.msk.f32.vlgmr.msra.gmra.mrb[0].mxu0 %vm23_vm0, %v94_v61 }
 0x141   :  { %v96_v63 = vadd.f32 %v208_v49, %v86_v62 }
 0x143   :  { %233 = vmatmul.mubr.msk.f32.vlgmr.msra.gmra.mrb[0].mxu1 %vm23_vm0, %v96_v63 }
 0x213   :  { %v231_v0 = vpop.f32.mrb[0].mxu0 }
 0x214   :  { %200 = vst.msk [vmem:[%s338_s4 + $0x8] sm:$0xff] %vm198_vm1, %v231_v0  ;;  %v179_v1 = vpop.f32.mrb[1].mxu0 }
 0x215   :  { %199 = vst.msk [vmem:[%s338_s4] sm:$0xff] %vm198_vm1, %v179_v1 }
 0x216   :  { %v234_v2 = vpop.f32.mrb[0].mxu1 }
 0x217   :  { %202 = vst.msk [vmem:[%s338_s4 + $0x18] sm:$0xff] %vm198_vm1, %v234_v2  ;;  %v189_v3 = vpop.f32.mrb[1].mxu1 }
 0x218   :  { %201 = vst.msk [vmem:[%s338_s4 + $0x10] sm:$0xff] %vm198_vm1, %v189_v3 }

// kernel: transformer_forward.10
= control target key start
LH: loop header
LB: loop body
LE: loop exit
PB: predicated region body
PF: predicated region fallthrough
CT: control target
= control target key end

     0   :  { %vm25_vm0 = vcmask 261120   ;;  %s273_s1 = inlined_call_operand.vmem [shape: f32[32,32], index: 1, kind: input, shape index: {}]   ;;  %s274_s0 = inlined_call_operand.vmem [shape: f32[32,32], index: 0, kind: input, shape index: {}]   ;;  %s275_s3 = inlined_call_operand.vmem [shape: f32[32,32], index: 3, kind: input, shape index: {}]   ;;  %s276_s2 = inlined_call_operand.vmem [shape: f32[1,32], index: 2, kind: input, shape index: {}]   ;;  %s277_s4 = inlined_call_operand.vmem [shape: f32[32,32], index: 4, kind: output, shape index: {}]  }
   0x1   :  { %v21_v0 = vld [vmem:[%s273_s1] sm:$0xff]  ;;  %v22_v1 = vld [vmem:[%s273_s1 + $0x8] sm:$0xff]  ;;  %v23_v2 = vld [vmem:[%s273_s1 + $0x10] sm:$0xff] }
   0x2   :  { %v177_v3 = vpack.c.bf16 %v22_v1, %v21_v0  ;;  %v24_v4 = vld [vmem:[%s273_s1 + $0x18] sm:$0xff]  ;;  %v17_v5 = vld [vmem:[%s274_s0] sm:$0xff]  ;;  %v19_v6 = vld [vmem:[%s274_s0 + $0x10] sm:$0xff] }
   0x3   :  { %v181_v7 = vpack.c.bf16 %v24_v4, %v23_v2  ;;  %171 = vmatprep.mubr.msk.f32.mxu0 %vm25_vm0, %v17_v5  ;;  %174 = vmatprep.mubr.msk.f32.mxu1 %vm25_vm0, %v19_v6  ;;  %v18_v8 = vld [vmem:[%s274_s0 + $0x8] sm:$0xff]  ;;  %v20_v9 = vld [vmem:[%s274_s0 + $0x18] sm:$0xff]  ;;  %v123_v12 = vld [vmem:[%s275_s3] sm:$0xff] }
   0x4   :  { %178 = vmatprep.subr.bf16.mxu0 %v177_v3  ;;  %185 = vmatprep.subr.bf16.mxu1 %v177_v3  ;;  %v124_v10 = vld [vmem:[%s275_s3 + $0x8] sm:$0xff]  ;;  %v126_v11 = vld [vmem:[%s275_s3 + $0x18] sm:$0xff]  ;;  %v125_v13 = vld [vmem:[%s275_s3 + $0x10] sm:$0xff] }
   0x5   :  { %180 = vmatpush3.bf16.msra.mxu0 %v177_v3  ;;  %187 = vmatpush3.bf16.msra.mxu1 %v177_v3  ;;  %v154_v15 = vld [vmem:[%s276_s2] ss:$0 sm:$0xff] }
   0x6   :  { %182 = vmatprep.subr.bf16.mxu0 %v181_v7  ;;  %186 = vmatprep.subr.bf16.mxu1 %v181_v7 }
   0x9   :  { %184 = vmatpush3.bf16.msra.mxu0 %v181_v7  ;;  %188 = vmatpush3.bf16.msra.mxu1 %v181_v7 }
   0xc   :  { %172 = vmatmul.mubr.msk.f32.vlgmr.msra.gmra.mrb[0].mxu0 %vm25_vm0, %v18_v8  ;;  %175 = vmatmul.mubr.msk.f32.vlgmr.msra.gmra.mrb[0].mxu1 %vm25_vm0, %v20_v9 }
  0xdf   :  { %v173_v14 = vpop.f32.mrb[0].mxu0  ;;  %v176_v16 = vpop.f32.mrb[0].mxu1 }
  0xe0   :  { %v128_v17 = vadd.f32 %v173_v14, %v124_v10  ;;  %v130_v18 = vadd.f32 %v176_v16, %v126_v11  ;;  %v104_v19 = vpop.f32.mrb[1].mxu0  ;;  %v114_v20 = vpop.f32.mrb[1].mxu1 }
  0xe1   :  { %v127_v21 = vadd.f32 %v123_v12, %v104_v19  ;;  %v129_v22 = vadd.f32 %v125_v13, %v114_v20 }
  0xe2   :  { %v139_v23 = vadd.f32 %v154_v15, %v128_v17  ;;  %v141_v24 = vadd.f32 %v154_v15, %v130_v18 }
  0xe3   :  { %v138_v25 = vadd.f32 %v154_v15, %v127_v21  ;;  %v140_v26 = vadd.f32 %v154_v15, %v129_v22 }
  0xe4   :  { %143 = vst.msk [vmem:[%s277_s4 + $0x8] sm:$0xff] %vm25_vm0, %v139_v23  ;;  %145 = vst.msk [vmem:[%s277_s4 + $0x18] sm:$0xff] %vm25_vm0, %v141_v24 }
  0xe5   :  { %142 = vst.msk [vmem:[%s277_s4] sm:$0xff] %vm25_vm0, %v138_v25  ;;  %144 = vst.msk [vmem:[%s277_s4 + $0x10] sm:$0xff] %vm25_vm0, %v140_v26 }

// kernel: transformer_forward.9
= control target key start
LH: loop header
LB: loop body
LE: loop exit
PB: predicated region body
PF: predicated region fallthrough
CT: control target
= control target key end

     0   :  { %s1504_s6 = smov 0   ;;  %s1674_s0 = inlined_call_operand.vmem [shape: f32[2,16,96], index: 0, kind: input, shape index: {}]   ;;  %s1675_s1 = inlined_call_operand.vmem [shape: f32[2,16,32], index: 1, kind: output, shape index: {}]  }
   0x1 LB: > { %s1259_s7 = sadd.s32 4294967295, %s1475_s6   ;;  %p1263_p0 = scmp.ge.s32.totalorder %s1475_s6, 1  ;;  %s1475_s6 = sphi %s1504_s6, %s11_s6  }
   0x2   : > { %p87_p1 = scmp.lt.s32.totalorder %s1475_s6, 3 }
   0x4   : > { %p88_p2 = pnand %p1263_p0, %p87_p1 }
   0x5   : > { %p107_p3 = scmp.lt.s32.totalorder (!%p88_p2), %s1259_s7, 1  ;;  %vm142_vm0 = vcmask (!%p88_p2), 326912   ;;  %s1477_s12 = smov (!%p88_p2), 64   ;;  %vm406_vm1 = vcmask (!%p88_p2), 392512   ;;  %vm119_vm2 = vcmask (!%p88_p2), 64512   ;;  %v1480_v62 = vmov (!%p88_p2), 0.0|0.0  }
   0x6   : > { %91 = sbr.rel (%p88_p2) target bundleno = 1218 (0x4c2), region = 24  ;;  %s1478_s13 = smov (!%p88_p2), 96   ;;  %1356 = vmatprep.subr.bf16.mxu0 (!%p88_p2), %v1480_v62  ;;  %vm1481_vm3 = vmmov (!%p88_p2), 0   ;;  %vm671_vm4 = vcmask (!%p88_p2), 458112   ;;  %vm936_vm5 = vcmask (!%p88_p2), 523712   ;;  %vm220_vm6 = vcmask (!%p88_p2), 130048  }
   0x7   : > { %s1479_s14 = smov (!%p88_p2), 88   ;;  %s1483_s15 = smov (!%p88_p2), 80   ;;  %vm375_vm7 = vcmask (!%p88_p2), 130112   ;;  %vm905_vm8 = vcmask (!%p88_p2), 261312   ;;  %vm640_vm9 = vcmask (!%p88_p2), 195712   ;;  %vm1198_vm10 = vcmask (!%p88_p2), 195584  }
   0x8   : > { %s1484_s16 = smov (!%p88_p2), 72   ;;  %s1485_s17 = smov (!%p88_p2), 48   ;;  %vm1201_vm11 = vcmask (!%p88_p2), 261120  }
   0x9   : > { %s1486_s18 = smov (!%p88_p2), 40   ;;  %s1487_s19 = smov (!%p88_p2), 56  }
   0xa   : > { %s1488_s20 = smov (!%p88_p2), 120   ;;  %s1489_s21 = smov (!%p88_p2), 112  }
   0xb   : > { %s1490_s22 = smov (!%p88_p2), 104   ;;  %s1491_s23 = smov (!%p88_p2), 8  }
   0xc   : > { %s1492_s24 = smov (!%p88_p2), 16   ;;  %s1493_s25 = smov (!%p88_p2), 24  }
   0xd   : > { %s1677_s7 = smov (!%p107_p3, %s1259_s7), 1 }
   0xe   : > { %s1282_s8 = sshll.u32 %s1677_s7, 4 }
   0xf   : > { %s111_s11 = scalar_lea.vmem %s1674_s0, %s1282_s8  ;;  %s116_s28 = scalar_lea.vmem %s1675_s1, %s1282_s8 }
  0x10   : > { %v1520_v0 = vld [vmem:[%s111_s11] sm:$0xff]  ;;  %v1522_v1 = vld [vmem:[%s111_s11 + $0x8] sm:$0xff] }
  0x11   : > { %v143_v2 = vsel %vm142_vm0, %v1520_v0, -inf  ;;  %v144_v3 = vsel %vm142_vm0, %v1522_v1, -inf  ;;  %v1530_v5 = vpack.i.bf16 %v1522_v1, %v1520_v0  ;;  %v407_v22 = vsel %vm406_vm1, %v1520_v0, -inf }
  0x12   : > { %v145_v4 = vmax.f32 %v143_v2, %v144_v3  ;;  %v408_v23 = vsel %vm406_vm1, %v1522_v1, -inf  ;;  %v120_v55 = vsel %vm119_vm2, %v1520_v0, -inf  ;;  %v123_v57 = vsel %vm119_vm2, %v1522_v1, -inf }
  0x13   : > { %1394 = vrot.lane.b32.xlu1 %v1530_v5, %s1477_s12  ;;  %v409_v24 = vmax.f32 %v407_v22, %v408_v23  ;;  %v1482_v2 = vmov 0.0   ;;  %v672_v3 = vsel %vm671_vm4, %v1520_v0, -inf }
  0x14   : > { %v146_v6 = vrot.slane %v145_v4, 4  ;;  %1312 = vmatprep.mubr.msk.f32.mxu0 %vm1481_vm3, %v1482_v2 }
  0x15   : > { %v410_v26 = vrot.slane %v409_v24, 4 }
  0x16   : > { %v147_v7 = vmax.f32 %v145_v4, %v146_v6  ;;  %v673_v4 = vsel %vm671_vm4, %v1522_v1, -inf }
  0x17   : > { %v411_v28 = vmax.f32 %v409_v24, %v410_v26 }
  0x18   : > { %v148_v8 = vrot.slane %v147_v7, 2 }
  0x19   : > { %v412_v30 = vrot.slane %v411_v28, 2 }
  0x1a   : > { %v149_v9 = vmax.f32 %v147_v7, %v148_v8  ;;  %v674_v7 = vmax.f32 %v672_v3, %v673_v4 }
  0x1b   : > { %v413_v32 = vmax.f32 %v411_v28, %v412_v30 }
  0x1c   : > { %v150_v10 = vrot.slane %v149_v9, 1 }
  0x1d   : > { %v414_v34 = vrot.slane %v413_v32, 1 }
  0x1e   : > { %v151_v11 = vmax.f32 %v149_v9, %v150_v10  ;;  %v937_v9 = vsel %vm936_vm5, %v1520_v0, -inf  ;;  %v938_v10 = vsel %vm936_vm5, %v1522_v1, -inf }
  0x1f   : > { %v415_v35 = vmax.f32 %v413_v32, %v414_v34 }
  0x20   : > { %v152_v12 = vsub.f32 %v1520_v0, %v151_v11  ;;  %v153_v13 = vsub.f32 %v1522_v1, %v151_v11  ;;  %v675_v11 = vrot.slane %v674_v7, 4 }
  0x21   : > { %v416_v36 = vsub.f32 %v1520_v0, %v415_v35  ;;  %v417_v37 = vsub.f32 %v1522_v1, %v415_v35 }
  0x22   : > { %v154_v14 = vmul.f32 1.442695, %v152_v12  ;;  %v156_v15 = vmul.f32 1.442695, %v153_v13  ;;  %v939_v12 = vmax.f32 %v937_v9, %v938_v10  ;;  %v676_v13 = vmax.f32 %v674_v7, %v675_v11 }
  0x23   : > { %v418_v38 = vmul.f32 1.442695, %v416_v36  ;;  %v420_v39 = vmul.f32 1.442695, %v417_v37 }
  0x24   : > { %1413 = vpow2.f32 %v154_v14  ;;  %v940_v14 = vrot.slane %v939_v12, 4 }
  0x25   : > { %1415 = vpow2.f32 %v156_v15  ;;  %v677_v15 = vrot.slane %v676_v13, 2 }
  0x2e   : > { %v1414_v16 = vpop.eup %1413 }
  0x2f   : > { %v1416_v17 = vpop.eup %1415  ;;  %v158_v18 = vsel %vm142_vm0, %v1414_v16, 0.0 }
  0x30   : > { %v159_v19 = vsel %vm142_vm0, %v1416_v17, 0.0 }
  0x31   : > { %v160_v20 = vadd.f32 %v159_v19, %v158_v18 }
  0x33   : > { %v161_v21 = vrot.slane %v160_v20, 4 }
  0x35   : > { %v162_v25 = vadd.f32 %v161_v21, %v160_v20 }
  0x37   : > { %v163_v27 = vrot.slane %v162_v25, 2 }
  0x39   : > { %v164_v29 = vadd.f32 %v163_v27, %v162_v25 }
  0x3b   : > { %v165_v31 = vrot.slane %v164_v29, 1 }
  0x3d   : > { %v166_v33 = vadd.f32 %v165_v31, %v164_v29 }
  0x3f   : > { %1417 = vrcp.f32 %v166_v33 }
  0x40   : > { %1419 = vpow2.f32 %v418_v38 }
  0x41   : > { %1421 = vpow2.f32 %v420_v39 }
  0x49   : > { %v1418_v40 = vpop.eup %1417 }
  0x4a   : > { %v168_v41 = vmul.f32 %v1418_v40, %v1414_v16  ;;  %v169_v42 = vmul.f32 %v1418_v40, %v1416_v17  ;;  %v1420_v43 = vpop.eup %1419  ;;  %v941_v16 = vmax.f32 %v939_v12, %v940_v14  ;;  %v678_v17 = vmax.f32 %v676_v13, %v677_v15 }
  0x4b   : > { %v1422_v44 = vpop.eup %1421  ;;  %v422_v45 = vsel %vm406_vm1, %v1420_v43, 0.0  ;;  %v379_v12 = vsel %vm375_vm7, %v1522_v1, -inf  ;;  %v376_v13 = vsel %vm375_vm7, %v1520_v0, -inf  ;;  %v909_v14 = vsel %vm905_vm8, %v1522_v1, -inf }
  0x4c   : > { %174 = vrot.lane.b32.xlu0 %v168_v41, %s1478_s13  ;;  %v423_v46 = vsel %vm406_vm1, %v1422_v44, 0.0  ;;  %v942_v18 = vrot.slane %v941_v16, 2  ;;  %v679_v19 = vrot.slane %v678_v17, 1  ;;  %v641_v15 = vsel %vm640_vm9, %v1520_v0, -inf }
  0x4d   : > { %v424_v47 = vadd.f32 %v423_v46, %v422_v45 }
  0x4e   : > { %v943_v20 = vmax.f32 %v941_v16, %v942_v18  ;;  %v680_v21 = vmax.f32 %v678_v17, %v679_v19  ;;  %v644_v16 = vsel %vm640_vm9, %v1522_v1, -inf  ;;  %v906_v17 = vsel %vm905_vm8, %v1520_v0, -inf }
  0x4f   : > { %v425_v48 = vrot.slane %v424_v47, 4 }
  0x50   : > { %176 = vrot.lane.b32.xlu0 %v169_v42, %s1478_s13  ;;  %v944_v22 = vrot.slane %v943_v20, 1  ;;  %v681_v23 = vsub.f32 %v1520_v0, %v680_v21  ;;  %v682_v24 = vsub.f32 %v1522_v1, %v680_v21 }
  0x51   : > { %v426_v49 = vadd.f32 %v425_v48, %v424_v47 }
  0x52   : > { %v945_v25 = vmax.f32 %v943_v20, %v944_v22  ;;  %v683_v26 = vmul.f32 1.442695, %v681_v23  ;;  %v685_v27 = vmul.f32 1.442695, %v682_v24 }
  0x53   : > { %v427_v50 = vrot.slane %v426_v49, 2 }
  0x54   : > { %v946_v28 = vsub.f32 %v1520_v0, %v945_v25  ;;  %v947_v29 = vsub.f32 %v1522_v1, %v945_v25 }
  0x55   : > { %v428_v51 = vadd.f32 %v427_v50, %v426_v49 }
  0x56   : > { %v948_v30 = vmul.f32 1.442695, %v946_v28  ;;  %v950_v31 = vmul.f32 1.442695, %v947_v29 }
  0x57   : > { %v429_v52 = vrot.slane %v428_v51, 1 }
  0x59   : > { %v430_v53 = vadd.f32 %v429_v52, %v428_v51 }
  0x5b   : > { %1423 = vrcp.f32 %v430_v53 }
  0x5c   : > { %1425 = vpow2.f32 %v683_v26 }
  0x5d   : > { %1427 = vpow2.f32 %v685_v27 }
  0x5e   : > { %1429 = vpow2.f32 %v948_v30 }
  0x5f   : > { %1431 = vpow2.f32 %v950_v31 }
  0x65   : > { %v1424_v54 = vpop.eup %1423 }
  0x66   : > { %v433_v56 = vmul.f32 %v1424_v54, %v1422_v44  ;;  %v432_v58 = vmul.f32 %v1424_v54, %v1420_v43  ;;  %v1426_v32 = vpop.eup %1425 }
  0x67   : > { %v1428_v33 = vpop.eup %1427  ;;  %v687_v34 = vsel %vm671_vm4, %v1426_v32, 0.0 }
  0x68   : > { %v688_v35 = vsel %vm671_vm4, %v1428_v33, 0.0  ;;  %v1430_v36 = vpop.eup %1429 }
  0x69   : > { %v1432_v37 = vpop.eup %1431  ;;  %v689_v38 = vadd.f32 %v688_v35, %v687_v34  ;;  %v952_v39 = vsel %vm936_vm5, %v1430_v36, 0.0 }
  0x6a   : > { %v953_v40 = vsel %vm936_vm5, %v1432_v37, 0.0 }
  0x6b   : > { %v690_v41 = vrot.slane %v689_v38, 4  ;;  %v954_v42 = vadd.f32 %v953_v40, %v952_v39 }
  0x6d   : > { %v691_v45 = vadd.f32 %v690_v41, %v689_v38  ;;  %v955_v46 = vrot.slane %v954_v42, 4 }
  0x6f   : > { %121 = vmax.xlane.f32.xlu0 %v120_v55  ;;  %v692_v50 = vrot.slane %v691_v45, 2  ;;  %v956_v51 = vadd.f32 %v955_v46, %v954_v42 }
  0x71   : > { %v693_v53 = vadd.f32 %v692_v50, %v691_v45  ;;  %v957_v54 = vrot.slane %v956_v51, 2 }
  0x73   : > { %124 = vmax.xlane.f32.xlu0 %v123_v57  ;;  %v694_v55 = vrot.slane %v693_v53, 1 }
  0x85   : > { %v1395_v59 = vpop.permute.xlu1 %1394 }
  0x86   : > { %v1397_v60 = vunpack.i.h.bf16 %v1395_v59  ;;  %v1396_v61 = vunpack.i.l.bf16 %v1395_v59  ;;  %v695_v59 = vadd.f32 %v694_v55, %v693_v53 }
  0x88   : > { %v1357_v63 = vpack.c.bf16 %v1397_v60, %v1396_v61 }
  0x89   : > { %438 = vrot.lane.b32.xlu0 %v432_v58, %s1479_s14 }
  0x8a   : > { %1358 = vmatpush3.bf16.msra.mxu0 %v1357_v63 }
  0xbe   : > { %v175_v6 = vpop.permute.xlu0 %174 }
  0xbf   : > { %180 = vxpose.xlu1.b32.start [1/2] (short) (narrow) %v175_v6, 8 }
  0xc2   : > { %v177_v8 = vpop.permute.xlu0 %176 }
  0xc3   : > { %181 = vxpose.xlu1.b32.end [2/2] (short) (narrow) %v177_v8, 8 }
  0xe1   : > { %440 = vrot.lane.b32.xlu1 %v433_v56, %s1479_s14  ;;  %v958_v56 = vadd.f32 %v957_v54, %v956_v51 }
  0xe3   : > { %v959_v60 = vrot.slane %v958_v56, 1 }
  0xe5   : > { %v960_v3 = vadd.f32 %v959_v60, %v958_v56 }
  0xfc   : > { %v122_v43 = vpop.xlane.xlu0 %121 }
  0xfd   : > { %v126_v44 = vsub.f32 %v1520_v0, %v122_v43 }
  0xff   : > { %v128_v47 = vmul.f32 1.442695, %v126_v44 }
 0x100   : > { %v125_v48 = vpop.xlane.xlu0 %124 }
 0x101   : > { %1433 = vpow2.f32 %v128_v47  ;;  %v127_v49 = vsub.f32 %v1522_v1, %v125_v48 }
 0x103   : > { %v130_v52 = vmul.f32 1.442695, %v127_v49 }
 0x104   : > { %v439_v18 = vpop.permute.xlu0 %438 }
 0x105   : > { %1435 = vpow2.f32 %v130_v52 }
 0x106   : > { %1437 = vrcp.f32 %v695_v59 }
 0x107   : > { %1439 = vrcp.f32 %v960_v3 }
 0x10b   : > { %v1434_v57 = vpop.eup %1433 }
 0x10c   : > { %v132_v58 = vsel %vm119_vm2, %v1434_v57, 0.0 }
 0x10d   : > { %133 = vadd.xlane.f32.xlu0 %v132_v58 }
 0x10f   : > { %v1573_v61 = vpop.eup %1435 }
 0x110   : > { %v135_v63 = vsel %vm119_vm2, %v1573_v61, 0.0  ;;  %v1438_v4 = vpop.eup %1437 }
 0x111   : > { %136 = vadd.xlane.f32.xlu1 %v135_v63  ;;  %v698_v6 = vmul.f32 %v1438_v4, %v1428_v33  ;;  %v697_v7 = vmul.f32 %v1438_v4, %v1426_v32  ;;  %v1440_v8 = vpop.eup %1439 }
 0x112   : > { %v962_v9 = vmul.f32 %v1440_v8, %v1430_v36  ;;  %v963_v10 = vmul.f32 %v1440_v8, %v1432_v37 }
 0x122   : > { %705 = vrot.lane.b32.xlu1 %v698_v6, %s1483_s15 }
 0x123   : > { %703 = vrot.lane.b32.xlu0 %v697_v7, %s1483_s15 }
 0x127   : > { %968 = vrot.lane.b32.xlu0 %v962_v9, %s1484_s16 }
 0x12b   : > { %970 = vrot.lane.b32.xlu0 %v963_v10, %s1484_s16 }
 0x13f   : > { %v196_v11 = vpop.trf.xlu1 }
 0x140   : > { %1313 = vmatmul.mubr.msk.f32.vlgmr.msra.gmra.mrb[0].mxu0 %vm220_vm6, %v196_v11 }
 0x146   : > { %380 = vmax.xlane.f32.xlu1 %v379_v12 }
 0x14a   : > { %377 = vmax.xlane.f32.xlu0 %v376_v13  ;;  %910 = vmax.xlane.f32.xlu1 %v909_v14 }
 0x14e   : > { %642 = vmax.xlane.f32.xlu0 %v641_v15 }
 0x152   : > { %645 = vmax.xlane.f32.xlu0 %v644_v16 }
 0x153   : > { %v441_v19 = vpop.permute.xlu1 %440 }
 0x156   : > { %907 = vmax.xlane.f32.xlu0 %v906_v17 }
 0x15b   : > { %1404 = vrot.lane.b32.xlu1 %v1530_v5, %s1485_s17 }
 0x15f   : > { %1409 = vrot.lane.b32.xlu1 %v1530_v5, %s1486_s18 }
 0x16c   : > { %1399 = vrot.lane.b32.xlu0 %v1530_v5, %s1487_s19 }
 0x18a   : > { %444 = vxpose.xlu0.b32.start [1/2] (short) (narrow) %v439_v18, 8 }
 0x18e   : > { %445 = vxpose.xlu0.b32.end [2/2] (short) (narrow) %v441_v19, 8 }
 0x19a   : > { %v134_v20 = vpop.xlane.xlu0 %133 }
 0x19b   : > { %1441 = vrcp.f32 %v134_v20 }
 0x19e   : > { %v137_v21 = vpop.xlane.xlu1 %136  ;;  %v704_v22 = vpop.permute.xlu0 %703 }
 0x19f   : > { %709 = vxpose.xlu1.b32.start [1/2] (short) (narrow) %v704_v22, 8 }
 0x1a2   : > { %v706_v23 = vpop.permute.xlu1 %705  ;;  %v969_v24 = vpop.permute.xlu0 %968 }
 0x1a3   : > { %710 = vxpose.xlu1.b32.end [2/2] (short) (narrow) %v706_v23, 8  ;;  %974 = vxpose.xlu0.b32.start [1/2] (short) (narrow) %v969_v24, 8 }
 0x1a5   : > { %v1442_v25 = vpop.eup %1441 }
 0x1a6   : > { %v971_v26 = vpop.permute.xlu0 %970  ;;  %v140_v27 = vmul.f32 %v1442_v25, %v1434_v57 }
 0x1a7   : > { %975 = vxpose.xlu0.b32.end [2/2] (short) (narrow) %v971_v26, 8 }
 0x1a8   : > { %v170_v28 = vmul.f32 0.35355338, %v140_v27 }
 0x1aa   : > { %1317 = vmatprep.mubr.msk.f32.mxu1 %vm119_vm2, %v170_v28 }
 0x1d3   : > { %v381_v5 = vpop.xlane.xlu1 %380 }
 0x1d4   : > { %v383_v29 = vsub.f32 %v1522_v1, %v381_v5 }
 0x1d6   : > { %v386_v30 = vmul.f32 1.442695, %v383_v29 }
 0x1d7   : > { %v378_v31 = vpop.xlane.xlu0 %377  ;;  %v911_v35 = vpop.xlane.xlu1 %910 }
 0x1d8   : > { %1443 = vpow2.f32 %v386_v30  ;;  %v382_v32 = vsub.f32 %v1520_v0, %v378_v31  ;;  %v913_v38 = vsub.f32 %v1522_v1, %v911_v35 }
 0x1da   : > { %v384_v33 = vmul.f32 1.442695, %v382_v32  ;;  %v916_v43 = vmul.f32 1.442695, %v913_v38 }
 0x1db   : > { %v643_v34 = vpop.xlane.xlu0 %642  ;;  %v1405_v55 = vpop.permute.xlu1 %1404 }
 0x1dc   : > { %1445 = vpow2.f32 %v384_v33  ;;  %v647_v36 = vsub.f32 %v1520_v0, %v643_v34  ;;  %v1407_v60 = vunpack.i.h.bf16 %v1405_v55  ;;  %v1406_v63 = vunpack.i.l.bf16 %v1405_v55 }
 0x1de   : > { %v649_v37 = vmul.f32 1.442695, %v647_v36  ;;  %v1363_v4 = vpack.c.bf16 %v1407_v60, %v1406_v63 }
 0x1df   : > { %v646_v39 = vpop.xlane.xlu0 %645  ;;  %v1410_v3 = vpop.permute.xlu1 %1409 }
 0x1e0   : > { %1447 = vpow2.f32 %v649_v37  ;;  %v648_v40 = vsub.f32 %v1522_v1, %v646_v39  ;;  %v1412_v6 = vunpack.i.h.bf16 %v1410_v3  ;;  %v1411_v7 = vunpack.i.l.bf16 %v1410_v3 }
 0x1e2   : > { %v1593_v41 = vpop.eup %1443  ;;  %v651_v42 = vmul.f32 1.442695, %v648_v40  ;;  %v1366_v8 = vpack.c.bf16 %v1412_v6, %v1411_v7 }
 0x1e3   : > { %392 = vrot.lane.b32.xlu1 %v1593_v41, %s1488_s20  ;;  %v908_v44 = vpop.xlane.xlu0 %907 }
 0x1e4   : > { %1449 = vpow2.f32 %v651_v42  ;;  %v912_v45 = vsub.f32 %v1520_v0, %v908_v44 }
 0x1e5   : > { %1451 = vpow2.f32 %v916_v43 }
 0x1e6   : > { %v1598_v46 = vpop.eup %1445  ;;  %v914_v47 = vmul.f32 1.442695, %v912_v45 }
 0x1e7   : > { %390 = vrot.lane.b32.xlu0 %v1598_v46, %s1488_s20  ;;  %v1400_v51 = vpop.permute.xlu0 %1399 }
 0x1e8   : > { %1453 = vpow2.f32 %v914_v47  ;;  %v1402_v53 = vunpack.i.h.bf16 %v1400_v51  ;;  %v1401_v54 = vunpack.i.l.bf16 %v1400_v51 }
 0x1e9   : > { %1455 = vrcp.f32 %v137_v21 }
 0x1ea   : > { %v1602_v1 = vpop.eup %1447  ;;  %v1360_v59 = vpack.c.bf16 %v1402_v53, %v1401_v54 }
 0x1eb   : > { %655 = vrot.lane.b32.xlu1 %v1602_v1, %s1489_s21 }
 0x1ee   : > { %v1606_v48 = vpop.eup %1449 }
 0x1ef   : > { %657 = vrot.lane.b32.xlu1 %v1606_v48, %s1489_s21  ;;  %v1610_v0 = vpop.eup %1451 }
 0x1f2   : > { %v1612_v49 = vpop.eup %1453 }
 0x1f3   : > { %922 = vrot.lane.b32.xlu1 %v1610_v0, %s1490_s22  ;;  %920 = vrot.lane.b32.xlu0 %v1612_v49, %s1490_s22  ;;  %v1456_v50 = vpop.eup %1455 }
 0x1f4   : > { %v141_v52 = vmul.f32 %v1456_v50, %v1573_v61 }
 0x1f6   : > { %v171_v57 = vmul.f32 0.35355338, %v141_v52 }
 0x20a   : > { %v460_v61 = vpop.trf.xlu0 }
 0x213   : > { %v290_v56 = vpop.f32.mrb[0].mxu0 }
 0x214   : > { %1315 = vmatprep.subr.mxu1 %v290_v56  ;;  %v1314_v58 = vpop.f32.mrb[1].mxu0 }
 0x215   : > { %1316 = vmatpush3.msra.mxu1 %v290_v56 }
 0x216   : > { %1318 = vmatmul.mubr.msk.f32.vlgmr.msra.gmra.mrb[0].mxu1 %vm119_vm2, %v171_v57  ;;  %1359 = vmatprep.subr.bf16.mxu1 %v1480_v62 }
 0x217   : > { %1361 = vmatpush3.bf16.msra.mxu1 %v1360_v59  ;;  %1324 = vmatprep.mubr.msk.f32.mxu1 %vm1481_vm3, %v1482_v2 }
 0x218   : > { %1362 = vmatprep.subr.bf16.mxu1 %v1480_v62 }
 0x21a   : > { %1325 = vmatmul.mubr.msk.f32.vlgmr.msra.gmra.mrb[2].mxu1 %vm220_vm6, %v460_v61 }
 0x21b   : > { %1364 = vmatpush3.bf16.msra.mxu1 %v1363_v4  ;;  %1336 = vmatprep.mubr.msk.f32.mxu1 %vm1481_vm3, %v1482_v2 }
 0x21c   : > { %1365 = vmatprep.subr.bf16.mxu1 %v1480_v62 }
 0x21f   : > { %v725_v9 = vpop.trf.xlu1 }
 0x220   : > { %1337 = vmatmul.mubr.msk.f32.vlgmr.msra.gmra.mrb[4].mxu1 %vm220_vm6, %v725_v9 }
 0x221   : > { %1367 = vmatpush3.bf16.msra.mxu1 %v1366_v8  ;;  %1348 = vmatprep.mubr.msk.f32.mxu1 %vm1481_vm3, %v1482_v2 }
 0x223   : > { %v990_v10 = vpop.trf.xlu0 }
 0x224   : > { %1349 = vmatmul.mubr.msk.f32.vlgmr.msra.gmra.mrb[6].mxu1 %vm220_vm6, %v990_v10 }
 0x255   : > { %v393_v11 = vpop.permute.xlu1 %392 }
 0x256   : > { %v399_v12 = vsel %vm119_vm2, %v393_v11, 0.0 }
 0x257   : > { %400 = vadd.xlane.f32.xlu1 %v399_v12 }
 0x259   : > { %v391_v13 = vpop.permute.xlu0 %390 }
 0x25a   : > { %v396_v14 = vsel %vm119_vm2, %v391_v13, 0.0 }
 0x25b   : > { %397 = vadd.xlane.f32.xlu0 %v396_v14 }
 0x25d   : > { %v656_v62 = vpop.permute.xlu1 %655 }
 0x25e   : > { %v661_v15 = vsel %vm119_vm2, %v656_v62, 0.0 }
 0x25f   : > { %662 = vadd.xlane.f32.xlu0 %v661_v15 }
 0x261   : > { %v658_v16 = vpop.permute.xlu1 %657 }
 0x262   : > { %v664_v17 = vsel %vm119_vm2, %v658_v16, 0.0 }
 0x263   : > { %665 = vadd.xlane.f32.xlu0 %v664_v17 }
 0x265   : > { %v923_v2 = vpop.permute.xlu1 %922  ;;  %v921_v18 = vpop.permute.xlu0 %920 }
 0x266   : > { %v929_v19 = vsel %vm119_vm2, %v923_v2, 0.0  ;;  %v926_v20 = vsel %vm119_vm2, %v921_v18, 0.0 }
 0x267   : > { %930 = vadd.xlane.f32.xlu0 %v929_v19  ;;  %927 = vadd.xlane.f32.xlu1 %v926_v20 }
 0x2e4   : > { %v401_v21 = vpop.xlane.xlu1 %400 }
 0x2e5   : > { %1457 = vrcp.f32 %v401_v21 }
 0x2e8   : > { %v398_v22 = vpop.xlane.xlu0 %397 }
 0x2e9   : > { %1459 = vrcp.f32 %v398_v22  ;;  %v1638_v23 = vpop.f32.mrb[0].mxu1 }
 0x2ea   : > { %v1640_v24 = vpop.f32.mrb[1].mxu1 }
 0x2ec   : > { %v663_v25 = vpop.xlane.xlu0 %662 }
 0x2ed   : > { %1461 = vrcp.f32 %v663_v25  ;;  %v551_v26 = vpop.f32.mrb[2].mxu1 }
 0x2ee   : > { %v1326_v27 = vpop.f32.mrb[3].mxu1  ;;  %1327 = vmatprep.subr.mxu0 %v551_v26 }
 0x2ef   : > { %v1458_v28 = vpop.eup %1457  ;;  %1328 = vmatpush3.msra.mxu0 %v551_v26 }
 0x2f0   : > { %v666_v5 = vpop.xlane.xlu0 %665  ;;  %v405_v29 = vmul.f32 %v1458_v28, %v1593_v41 }
 0x2f1   : > { %1463 = vrcp.f32 %v666_v5 }
 0x2f2   : > { %v435_v30 = vmul.f32 0.35355338, %v405_v29 }
 0x2f3   : > { %v1460_v31 = vpop.eup %1459  ;;  %v816_v32 = vpop.f32.mrb[4].mxu1 }
 0x2f4   : > { %559 = vrot.lane.b32.xlu0 %v435_v30, %s1488_s20  ;;  %v928_v33 = vpop.xlane.xlu1 %927  ;;  %v931_v34 = vpop.xlane.xlu0 %930  ;;  %v404_v35 = vmul.f32 %v1460_v31, %v1598_v46  ;;  %1339 = vmatprep.subr.mxu0 %v816_v32 }
 0x2f5   : > { %1465 = vrcp.f32 %v928_v33  ;;  %v1338_v36 = vpop.f32.mrb[5].mxu1 }
 0x2f6   : > { %1467 = vrcp.f32 %v931_v34  ;;  %v434_v37 = vmul.f32 0.35355338, %v404_v35 }
 0x2f7   : > { %v1462_v38 = vpop.eup %1461  ;;  %v1081_v39 = vpop.f32.mrb[6].mxu1 }
 0x2f8   : > { %557 = vrot.lane.b32.xlu1 %v434_v37, %s1488_s20  ;;  %v669_v40 = vmul.f32 %v1462_v38, %v1602_v1  ;;  %v1350_v41 = vpop.f32.mrb[7].mxu1 }
 0x2fa   : > { %v699_v42 = vmul.f32 0.35355338, %v669_v40 }
 0x2fb   : > { %v1464_v43 = vpop.eup %1463 }
 0x2fc   : > { %822 = vrot.lane.b32.xlu1 %v699_v42, %s1489_s21  ;;  %v670_v44 = vmul.f32 %v1464_v43, %v1606_v48 }
 0x2fe   : > { %v700_v45 = vmul.f32 0.35355338, %v670_v44 }
 0x2ff   : > { %v1466_v46 = vpop.eup %1465 }
 0x300   : > { %v1468_v47 = vpop.eup %1467  ;;  %824 = vrot.lane.b32.xlu1 %v700_v45, %s1489_s21  ;;  %v934_v50 = vmul.f32 %v1466_v46, %v1612_v49 }
 0x301   : > { %v935_v51 = vmul.f32 %v1468_v47, %v1610_v0 }
 0x302   : > { %v964_v52 = vmul.f32 0.35355338, %v934_v50 }
 0x303   : > { %v965_v53 = vmul.f32 0.35355338, %v935_v51 }
 0x304   : > { %1087 = vrot.lane.b32.xlu0 %v964_v52, %s1490_s22 }
 0x305   : > { %1089 = vrot.lane.b32.xlu1 %v965_v53, %s1490_s22 }
 0x366   : > { %v560_v54 = vpop.permute.xlu0 %559 }
 0x36a   : > { %v558_v1 = vpop.permute.xlu1 %557 }
 0x36b   : > { %1329 = vmatprep.mubr.msk.f32.mxu0 %vm119_vm2, %v558_v1 }
 0x36c   : > { %1330 = vmatmul.mubr.msk.f32.vlgmr.msra.gmra.mrb[2].mxu0 %vm119_vm2, %v560_v54 }
 0x36d   : > { %1340 = vmatpush3.msra.mxu0 %v816_v32 }
 0x36e   : > { %1351 = vmatprep.subr.mxu0 %v1081_v39  ;;  %v823_v48 = vpop.permute.xlu1 %822 }
 0x36f   : > { %1341 = vmatprep.mubr.msk.f32.mxu0 %vm119_vm2, %v823_v48 }
 0x372   : > { %v825_v49 = vpop.permute.xlu1 %824 }
 0x373   : > { %1342 = vmatmul.mubr.msk.f32.vlgmr.msra.gmra.mrb[4].mxu0 %vm119_vm2, %v825_v49 }
 0x374   : > { %1352 = vmatpush3.msra.mxu0 %v1081_v39 }
 0x376   : > { %v1088_v0 = vpop.permute.xlu0 %1087 }
 0x377   : > { %v1090_v55 = vpop.permute.xlu1 %1089  ;;  %1353 = vmatprep.mubr.msk.f32.mxu0 %vm119_vm2, %v1088_v0 }
 0x378   : > { %1354 = vmatmul.mubr.msk.f32.vlgmr.msra.gmra.mrb[6].mxu0 %vm119_vm2, %v1090_v55 }
 0x43f   : > { %v1331_v56 = vpop.f32.mrb[2].mxu0 }
 0x440   : > { %1174 = vrot.lane.b32.xlu1 %v1331_v56, %s1491_s23  ;;  %v631_v57 = vpop.f32.mrb[3].mxu0 }
 0x441   : > { %1172 = vrot.lane.b32.xlu0 %v631_v57, %s1491_s23 }
 0x446   : > { %v1343_v58 = vpop.f32.mrb[4].mxu0 }
 0x447   : > { %1182 = vrot.lane.b32.xlu1 %v1343_v58, %s1492_s24  ;;  %v896_v59 = vpop.f32.mrb[5].mxu0 }
 0x448   : > { %1180 = vrot.lane.b32.xlu0 %v896_v59, %s1492_s24 }
 0x44b   : > { %v1355_v60 = vpop.f32.mrb[6].mxu0 }
 0x44c   : > { %1190 = vrot.lane.b32.xlu1 %v1355_v60, %s1493_s25  ;;  %v1161_v63 = vpop.f32.mrb[7].mxu0 }
 0x44d   : > { %1188 = vrot.lane.b32.xlu0 %v1161_v63, %s1493_s25 }
 0x4b2   : > { %v1175_v61 = vpop.permute.xlu1 %1174 }
 0x4b3   : > { %v1173_v3 = vpop.permute.xlu0 %1172  ;;  %v1195_v7 = vsel %vm119_vm2, %v1638_v23, %v1175_v61 }
 0x4b4   : > { %v1194_v8 = vsel %vm119_vm2, %v1640_v24, %v1173_v3 }
 0x4b9   : > { %v1183_v4 = vpop.permute.xlu1 %1182 }
 0x4ba   : > { %v1181_v6 = vpop.permute.xlu0 %1180  ;;  %v1197_v9 = vsel %vm220_vm6, %v1195_v7, %v1183_v4 }
 0x4bb   : > { %v1196_v11 = vsel %vm220_vm6, %v1194_v8, %v1181_v6 }
 0x4be   : > { %v1191_v10 = vpop.permute.xlu1 %1190 }
 0x4bf   : > { %v1200_v12 = vsel %vm1198_vm10, %v1197_v9, %v1191_v10  ;;  %v1189_v13 = vpop.permute.xlu0 %1188 }
 0x4c0   : > { %1203 = vst.msk [vmem:[%s116_s28 + $0x8] sm:$0xff] %vm1201_vm11, %v1200_v12  ;;  %v1199_v14 = vsel %vm1198_vm10, %v1196_v11, %v1189_v13 }
 0x4c1   : > { %1202 = vst.msk [vmem:[%s116_s28] sm:$0xff] %vm1201_vm11, %v1199_v14 }
 0x4c2 PF: > { %s11_s6 = sadd.s32 1, %s1475_s6  }
 0x4c3   : > { %p8_p4 = scmp.ge.s32.totalorder %s11_s6, 4  }
 0x4c5   :  { %10 = sbr.rel (!%p8_p4) target bundleno = 1 (0x1), region = 54 }

// kernel: transformer_forward.11
= control target key start
LH: loop header
LB: loop body
LE: loop exit
PB: predicated region body
PF: predicated region fallthrough
CT: control target
= control target key end

     0   :  { %vm32_vm0 = vcmask 261120   ;;  %s691_s0 = inlined_call_operand.vmem [shape: f32[32,32], index: 0, kind: input, shape index: {}]   ;;  %s692_s3 = inlined_call_operand.vmem [shape: f32[32,128], index: 3, kind: input, shape index: {}]   ;;  %s693_s5 = inlined_call_operand.vmem [shape: f32[128,32], index: 5, kind: input, shape index: {}]   ;;  %s694_s1 = inlined_call_operand.vmem [shape: f32[1,32], index: 1, kind: input, shape index: {}]   ;;  %s695_s2 = inlined_call_operand.vmem [shape: f32[1,32], index: 2, kind: input, shape index: {}]   ;;  %s696_s4 = inlined_call_operand.vmem [shape: f32[1,128], index: 4, kind: input, shape index: {}]   ;;  %s697_s6 = inlined_call_operand.vmem [shape: f32[1,32], index: 6, kind: input, shape index: {}]   ;;  %s698_s7 = inlined_call_operand.vmem [shape: f32[32,32], index: 7, kind: output, shape index: {}]  }
   0x1   :  { %v557_v0 = vld [vmem:[%s691_s0] sm:$0xff]  ;;  %v562_v1 = vld [vmem:[%s691_s0 + $0x10] sm:$0xff]  ;;  %v567_v2 = vld [vmem:[%s691_s0 + $0x8] sm:$0xff] }
   0x2   :  { %v33_v3 = vsel %vm32_vm0, %v557_v0, 0.0  ;;  %v39_v4 = vsel %vm32_vm0, %v562_v1, 0.0  ;;  %v576_v5 = vld [vmem:[%s691_s0 + $0x18] sm:$0xff]  ;;  %v36_v6 = vsel %vm32_vm0, %v567_v2, 0.0  ;;  %v106_v28 = vld [vmem:[%s692_s3] sm:$0xff]  ;;  %v107_v29 = vld [vmem:[%s692_s3 + $0x8] sm:$0xff] }
   0x3   :  { %34 = vadd.xlane.f32.xlu0 %v33_v3  ;;  %40 = vadd.xlane.f32.xlu1 %v39_v4  ;;  %v42_v7 = vsel %vm32_vm0, %v576_v5, 0.0  ;;  %v108_v30 = vld [vmem:[%s692_s3 + $0x10] sm:$0xff]  ;;  %v458_v31 = vpack.c.bf16 %v107_v29, %v106_v28  ;;  %v109_v32 = vld [vmem:[%s692_s3 + $0x18] sm:$0xff]  ;;  %v250_v34 = vld [vmem:[%s693_s5] sm:$0xff] }
   0x4   :  { %v462_v33 = vpack.c.bf16 %v109_v32, %v108_v30  ;;  %v251_v35 = vld [vmem:[%s693_s5 + $0x8] sm:$0xff]  ;;  %v370_v50 = vld [vmem:[%s694_s1] ss:$0 sm:$0xff] }
   0x5   :  { %459 = vmatprep.subr.bf16.mxu0 %v458_v31  ;;  %v466_v36 = vpack.c.bf16 %v251_v35, %v250_v34  ;;  %v371_v52 = vld [vmem:[%s695_s2] ss:$0 sm:$0xff] }
   0x6   :  { %461 = vmatpush3.bf16.msra.mxu0 %v458_v31  ;;  %v372_v28 = vld [vmem:[%s696_s4] ss:$0 sm:$0xff] }
   0x7   :  { %37 = vadd.xlane.f32.xlu0 %v36_v6  ;;  %43 = vadd.xlane.f32.xlu1 %v42_v7  ;;  %v252_v7 = vld [vmem:[%s693_s5 + $0x10] sm:$0xff] }
   0x8   :  { %463 = vmatprep.subr.bf16.mxu0 %v462_v33  ;;  %467 = vmatprep.subr.bf16.mxu1 %v466_v36 }
   0x9   :  { %469 = vmatpush3.bf16.msra.mxu1 %v466_v36 }
   0xa   :  { %465 = vmatpush3.bf16.msra.mxu0 %v462_v33 }
  0x90   :  { %v35_v8 = vpop.xlane.xlu0 %34  ;;  %v41_v9 = vpop.xlane.xlu1 %40 }
  0x91   :  { %v46_v10 = vmul.f32 0.03125, %v35_v8  ;;  %v48_v11 = vmul.f32 0.03125, %v41_v9  ;;  %v253_v8 = vld [vmem:[%s693_s5 + $0x18] sm:$0xff] }
  0x92   :  { %v470_v9 = vpack.c.bf16 %v253_v8, %v252_v7 }
  0x93   :  { %v50_v12 = vsub.f32 %v557_v0, %v46_v10  ;;  %v584_v13 = vsub.f32 %v562_v1, %v48_v11  ;;  %v254_v10 = vld [vmem:[%s693_s5 + $0x20] sm:$0xff]  ;;  %v255_v11 = vld [vmem:[%s693_s5 + $0x28] sm:$0xff] }
  0x94   :  { %v38_v14 = vpop.xlane.xlu0 %37  ;;  %v44_v15 = vpop.xlane.xlu1 %43  ;;  %471 = vmatprep.subr.bf16.mxu1 %v470_v9 }
  0x95   :  { %v47_v16 = vmul.f32 0.03125, %v38_v14  ;;  %v49_v17 = vmul.f32 0.03125, %v44_v15  ;;  %v54_v18 = vmul.f32 %v50_v12, %v50_v12  ;;  %v56_v19 = vmul.f32 %v584_v13, %v584_v13  ;;  %473 = vmatpush3.bf16.msra.mxu1 %v470_v9  ;;  %v257_v14 = vld [vmem:[%s693_s5 + $0x38] sm:$0xff] }
  0x97   :  { %v51_v20 = vsub.f32 %v567_v2, %v47_v16  ;;  %v53_v21 = vsub.f32 %v576_v5, %v49_v17  ;;  %v58_v22 = vsel %vm32_vm0, %v54_v18, 0.0  ;;  %v64_v23 = vsel %vm32_vm0, %v56_v19, 0.0  ;;  %v258_v16 = vld [vmem:[%s693_s5 + $0x40] sm:$0xff]  ;;  %v259_v17 = vld [vmem:[%s693_s5 + $0x48] sm:$0xff]  ;;  %v260_v18 = vld [vmem:[%s693_s5 + $0x50] sm:$0xff] }
  0x98   :  { %59 = vadd.xlane.f32.xlu0 %v58_v22  ;;  %v482_v19 = vpack.c.bf16 %v259_v17, %v258_v16  ;;  %v262_v22 = vld [vmem:[%s693_s5 + $0x60] sm:$0xff] }
  0x99   :  { %v55_v24 = vmul.f32 %v51_v20, %v51_v20  ;;  %v57_v25 = vmul.f32 %v53_v21, %v53_v21 }
  0x9b   :  { %v61_v26 = vsel %vm32_vm0, %v55_v24, 0.0  ;;  %v67_v27 = vsel %vm32_vm0, %v57_v25, 0.0  ;;  %v264_v25 = vld [vmem:[%s693_s5 + $0x70] sm:$0xff] }
  0x9c   :  { %65 = vadd.xlane.f32.xlu0 %v64_v23  ;;  %62 = vadd.xlane.f32.xlu1 %v61_v26  ;;  %v263_v23 = vld [vmem:[%s693_s5 + $0x68] sm:$0xff]  ;;  %v265_v26 = vld [vmem:[%s693_s5 + $0x78] sm:$0xff] }
  0x9d   :  { %v490_v24 = vpack.c.bf16 %v263_v23, %v262_v22 }
  0xa0   :  { %68 = vadd.xlane.f32.xlu1 %v67_v27  ;;  %v494_v27 = vpack.c.bf16 %v265_v26, %v264_v25 }
 0x125   :  { %v60_v37 = vpop.xlane.xlu0 %59 }
 0x126   :  { %v70_v38 = vmul.f32 0.03125, %v60_v37 }
 0x128   :  { %v74_v39 = vadd.f32 1e-05, %v70_v38 }
 0x129   :  { %v63_v40 = vpop.xlane.xlu1 %62  ;;  %v66_v41 = vpop.xlane.xlu0 %65 }
 0x12a   :  { %498 = vrsqrt.f32 %v74_v39  ;;  %v71_v42 = vmul.f32 0.03125, %v63_v40  ;;  %v72_v43 = vmul.f32 0.03125, %v66_v41 }
 0x12c   :  { %v75_v44 = vadd.f32 1e-05, %v71_v42  ;;  %v76_v45 = vadd.f32 1e-05, %v72_v43 }
 0x12d   :  { %v69_v46 = vpop.xlane.xlu1 %68 }
 0x12e   :  { %500 = vrsqrt.f32 %v75_v44  ;;  %v73_v47 = vmul.f32 0.03125, %v69_v46 }
 0x12f   :  { %502 = vrsqrt.f32 %v76_v45 }
 0x130   :  { %v77_v48 = vadd.f32 1e-05, %v73_v47 }
 0x132   :  { %504 = vrsqrt.f32 %v77_v48 }
 0x134   :  { %v499_v49 = vpop.eup %498 }
 0x135   :  { %v82_v51 = vmul.f32 %v499_v49, %v50_v12  ;;  %v474_v12 = vpack.c.bf16 %v255_v11, %v254_v10 }
 0x137   :  { %v92_v53 = vmul.f32 %v370_v50, %v82_v51  ;;  %475 = vmatprep.subr.bf16.mxu1 %v474_v12 }
 0x138   :  { %v501_v54 = vpop.eup %500  ;;  %477 = vmatpush3.bf16.msra.mxu1 %v474_v12 }
 0x139   :  { %v503_v55 = vpop.eup %502  ;;  %v102_v56 = vadd.f32 %v371_v52, %v92_v53  ;;  %v83_v57 = vmul.f32 %v501_v54, %v51_v20  ;;  %v261_v20 = vld [vmem:[%s693_s5 + $0x58] sm:$0xff] }
 0x13a   :  { %v84_v58 = vmul.f32 %v503_v55, %v584_v13  ;;  %v256_v13 = vld [vmem:[%s693_s5 + $0x30] sm:$0xff] }
 0x13b   :  { %414 = vmatprep.mubr.msk.f32.mxu0 %vm32_vm0, %v102_v56  ;;  %v93_v59 = vmul.f32 %v370_v50, %v83_v57  ;;  %v478_v15 = vpack.c.bf16 %v257_v14, %v256_v13  ;;  %v377_v13 = vld [vmem:[%s697_s6] ss:$0 sm:$0xff] }
 0x13c   :  { %v505_v60 = vpop.eup %504  ;;  %v94_v61 = vmul.f32 %v370_v50, %v84_v58 }
 0x13d   :  { %v103_v62 = vadd.f32 %v371_v52, %v93_v59  ;;  %v85_v63 = vmul.f32 %v505_v60, %v53_v21  ;;  %479 = vmatprep.subr.bf16.mxu1 %v478_v15  ;;  %v486_v21 = vpack.c.bf16 %v261_v20, %v260_v18 }
 0x13e   :  { %v104_v3 = vadd.f32 %v371_v52, %v94_v61  ;;  %481 = vmatpush3.bf16.msra.mxu1 %v478_v15 }
 0x13f   :  { %415 = vmatmul.mubr.msk.f32.vlgmr.msra.gmra.mrb[0].mxu0 %vm32_vm0, %v103_v62  ;;  %v95_v4 = vmul.f32 %v370_v50, %v85_v63  ;;  %483 = vmatprep.subr.bf16.mxu1 %v482_v19 }
 0x140   :  { %417 = vmatprep.mubr.msk.f32.mxu0 %vm32_vm0, %v104_v3 }
 0x141   :  { %v105_v6 = vadd.f32 %v371_v52, %v95_v4 }
 0x142   :  { %485 = vmatpush3.bf16.msra.mxu1 %v482_v19 }
 0x143   :  { %418 = vmatmul.mubr.msk.f32.gmra.mrb[2].mxu0 %vm32_vm0, %v105_v6  ;;  %487 = vmatprep.subr.bf16.mxu1 %v486_v21 }
 0x146   :  { %489 = vmatpush3.bf16.msra.mxu1 %v486_v21 }
 0x147   :  { %491 = vmatprep.subr.bf16.mxu1 %v490_v24 }
 0x14a   :  { %493 = vmatpush3.bf16.msra.mxu1 %v490_v24 }
 0x14b   :  { %495 = vmatprep.subr.bf16.mxu1 %v494_v27 }
 0x14e   :  { %497 = vmatpush3.bf16.msra.mxu1 %v494_v27 }
 0x212   :  { %v416_v29 = vpop.f32.mrb[0].mxu0 }
 0x213   :  { %v201_v30 = vadd.f32 %v416_v29, %v372_v28  ;;  %v195_v31 = vpop.f32.mrb[1].mxu0 }
 0x214   :  { %v196_v32 = vadd.f32 %v372_v28, %v195_v31 }
 0x215   :  { %v219_v33 = vmul.f32 0.044715, %v201_v30  ;;  %v215_v62 = vmul.f32 0.5, %v201_v30 }
 0x216   :  { %v419_v34 = vpop.f32.mrb[2].mxu0  ;;  %v218_v35 = vmul.f32 0.044715, %v196_v32  ;;  %v214_v60 = vmul.f32 0.5, %v196_v32 }
 0x217   :  { %v223_v36 = vmul.f32 %v219_v33, %v201_v30  ;;  %v211_v37 = vadd.f32 %v419_v34, %v372_v28  ;;  %v205_v38 = vpop.f32.mrb[3].mxu0 }
 0x218   :  { %v206_v39 = vadd.f32 %v372_v28, %v205_v38  ;;  %v222_v40 = vmul.f32 %v218_v35, %v196_v32 }
 0x219   :  { %v221_v41 = vmul.f32 0.044715, %v211_v37  ;;  %v227_v42 = vmul.f32 %v223_v36, %v201_v30  ;;  %v217_v10 = vmul.f32 0.5, %v211_v37 }
 0x21a   :  { %v220_v43 = vmul.f32 0.044715, %v206_v39  ;;  %v226_v44 = vmul.f32 %v222_v40, %v196_v32  ;;  %v216_v8 = vmul.f32 0.5, %v206_v39 }
 0x21b   :  { %v225_v45 = vmul.f32 %v221_v41, %v211_v37  ;;  %v231_v46 = vadd.f32 %v227_v42, %v201_v30 }
 0x21c   :  { %v224_v47 = vmul.f32 %v220_v43, %v206_v39  ;;  %v230_v48 = vadd.f32 %v226_v44, %v196_v32 }
 0x21d   :  { %v235_v49 = vmul.f32 0.7978846, %v231_v46  ;;  %v229_v50 = vmul.f32 %v225_v45, %v211_v37 }
 0x21e   :  { %v234_v51 = vmul.f32 0.7978846, %v230_v48  ;;  %v228_v52 = vmul.f32 %v224_v47, %v206_v39 }
 0x21f   :  { %506 = vtanh.f32 %v235_v49  ;;  %v233_v53 = vadd.f32 %v229_v50, %v211_v37 }
 0x220   :  { %508 = vtanh.f32 %v234_v51  ;;  %v232_v54 = vadd.f32 %v228_v52, %v206_v39 }
 0x221   :  { %v237_v55 = vmul.f32 0.7978846, %v233_v53 }
 0x222   :  { %v236_v56 = vmul.f32 0.7978846, %v232_v54 }
 0x223   :  { %510 = vtanh.f32 %v237_v55 }
 0x224   :  { %512 = vtanh.f32 %v236_v56 }
 0x229   :  { %v507_v57 = vpop.eup %506 }
 0x22a   :  { %v509_v58 = vpop.eup %508  ;;  %v243_v59 = vadd.f32 1.0, %v507_v57 }
 0x22b   :  { %v242_v61 = vadd.f32 1.0, %v509_v58 }
 0x22c   :  { %v247_v6 = vmul.f32 %v243_v59, %v215_v62 }
 0x22d   :  { %v511_v63 = vpop.eup %510  ;;  %v246_v3 = vmul.f32 %v242_v61, %v214_v60 }
 0x22e   :  { %v513_v4 = vpop.eup %512  ;;  %v245_v7 = vadd.f32 1.0, %v511_v63 }
 0x22f   :  { %452 = vmatprep.mubr.f32.mxu1 %v246_v3  ;;  %v244_v9 = vadd.f32 1.0, %v513_v4 }
 0x230   :  { %453 = vmatmul.mubr.f32.vlgmr.msra.gmra.mrb[0].mxu1 %v247_v6  ;;  %v249_v12 = vmul.f32 %v245_v7, %v217_v10 }
 0x231   :  { %v248_v11 = vmul.f32 %v244_v9, %v216_v8 }
 0x233   :  { %455 = vmatprep.mubr.f32.mxu1 %v248_v11 }
 0x234   :  { %456 = vmatmul.mubr.f32.gmra.mrb[2].mxu1 %v249_v12 }
 0x303   :  { %v454_v14 = vpop.f32.mrb[0].mxu1 }
 0x304   :  { %v345_v15 = vadd.f32 %v454_v14, %v377_v13  ;;  %v339_v16 = vpop.f32.mrb[1].mxu1 }
 0x305   :  { %v340_v17 = vadd.f32 %v377_v13, %v339_v16 }
 0x306   :  { %v359_v18 = vadd.f32 %v345_v15, %v567_v2 }
 0x307   :  { %v358_v19 = vadd.f32 %v340_v17, %v557_v0  ;;  %v457_v20 = vpop.f32.mrb[2].mxu1 }
 0x308   :  { %363 = vst.msk [vmem:[%s698_s7 + $0x8] sm:$0xff] %vm32_vm0, %v359_v18  ;;  %v355_v21 = vadd.f32 %v457_v20, %v377_v13  ;;  %v349_v22 = vpop.f32.mrb[3].mxu1 }
 0x309   :  { %362 = vst.msk [vmem:[%s698_s7] sm:$0xff] %vm32_vm0, %v358_v19  ;;  %v350_v23 = vadd.f32 %v377_v13, %v349_v22 }
 0x30a   :  { %v361_v24 = vadd.f32 %v355_v21, %v576_v5 }
 0x30b   :  { %v360_v2 = vadd.f32 %v350_v23, %v562_v1 }
 0x30c   :  { %365 = vst.msk [vmem:[%s698_s7 + $0x18] sm:$0xff] %vm32_vm0, %v361_v24 }
 0x30d   :  { %364 = vst.msk [vmem:[%s698_s7 + $0x10] sm:$0xff] %vm32_vm0, %v360_v2 }

// kernel: transformer_forward.15
= control target key start
LH: loop header
LB: loop body
LE: loop exit
PB: predicated region body
PF: predicated region fallthrough
CT: control target
= control target key end

     0   :  { %vm33_vm0 = vcmask 261120   ;;  %s729_s0 = inlined_call_operand.vmem [shape: f32[32,32], index: 0, kind: input, shape index: {}]   ;;  %s730_s1 = inlined_call_operand.vmem [shape: f32[1,32], index: 1, kind: input, shape index: {}]   ;;  %s731_s2 = inlined_call_operand.vmem [shape: f32[1,32], index: 2, kind: input, shape index: {}]   ;;  %s732_s3 = inlined_call_operand.vmem [shape: f32[32,128], index: 3, kind: input, shape index: {}]   ;;  %s733_s4 = inlined_call_operand.vmem [shape: f32[1,128], index: 4, kind: input, shape index: {}]   ;;  %s734_s5 = inlined_call_operand.vmem [shape: f32[128,32], index: 5, kind: input, shape index: {}]   ;;  %s735_s6 = inlined_call_operand.vmem [shape: f32[1,32], index: 6, kind: input, shape index: {}]   ;;  %s736_s7 = inlined_call_operand.hbm [shape: f32[32,32], index: 7, kind: output, shape index: {}]  }
   0x1   :  { %v600_v0 = vld [vmem:[%s729_s0] sm:$0xff]  ;;  %v605_v1 = vld [vmem:[%s729_s0 + $0x10] sm:$0xff]  ;;  %v610_v2 = vld [vmem:[%s729_s0 + $0x8] sm:$0xff] }
   0x2   :  { %v34_v3 = vsel %vm33_vm0, %v600_v0, 0.0  ;;  %v40_v4 = vsel %vm33_vm0, %v605_v1, 0.0  ;;  %v619_v5 = vld [vmem:[%s729_s0 + $0x18] sm:$0xff] }
   0x3   :  { %12 = vsyncpa [#allocation3], 0  ;;  %35 = vadd.xlane.f32.xlu0 %v34_v3  ;;  %41 = vadd.xlane.f32.xlu1 %v40_v4  ;;  %v37_v6 = vsel %vm33_vm0, %v610_v2, 0.0  ;;  %v43_v7 = vsel %vm33_vm0, %v619_v5, 0.0  ;;  %v107_v28 = vld [vmem:[%s732_s3] sm:$0xff]  ;;  %v108_v29 = vld [vmem:[%s732_s3 + $0x8] sm:$0xff] }
   0x4   :  { %v109_v30 = vld [vmem:[%s732_s3 + $0x10] sm:$0xff]  ;;  %v471_v31 = vpack.c.bf16 %v108_v29, %v107_v28  ;;  %v110_v32 = vld [vmem:[%s732_s3 + $0x18] sm:$0xff]  ;;  %v251_v34 = vld [vmem:[%s734_s5] sm:$0xff]  ;;  %s554_s24 = smov [#allocation2]  }
   0x5   :  { %v475_v33 = vpack.c.bf16 %v110_v32, %v109_v30  ;;  %v252_v35 = vld [vmem:[%s734_s5 + $0x8] sm:$0xff]  ;;  %v383_v50 = vld [vmem:[%s730_s1] ss:$0 sm:$0xff]  ;;  %s372_s25 = sshll.u32 %s554_s24, 4  ;;  %s373_s25 = int_to_ptr.vmem [resolvable:$true] %s372_s25 }
   0x6   :  { %472 = vmatprep.subr.bf16.mxu0 %v471_v31  ;;  %v479_v36 = vpack.c.bf16 %v252_v35, %v251_v34  ;;  %v384_v52 = vld [vmem:[%s731_s2] ss:$0 sm:$0xff]  ;;  %p535_p1 = scmp.lt.s32.totalorder %s373_s25, %s373_s25 }
   0x7   :  { %38 = vadd.xlane.f32.xlu0 %v37_v6  ;;  %44 = vadd.xlane.f32.xlu1 %v43_v7  ;;  %v253_v7 = vld [vmem:[%s734_s5 + $0x10] sm:$0xff]  ;;  %v385_v28 = vld [vmem:[%s733_s4] ss:$0 sm:$0xff] }
   0x8   :  { %474 = vmatpush3.bf16.msra.mxu0 %v471_v31  ;;  %480 = vmatprep.subr.bf16.mxu1 %v479_v36 }
   0x9   :  { %476 = vmatprep.subr.bf16.mxu0 %v475_v33  ;;  %482 = vmatpush3.bf16.msra.mxu1 %v479_v36 }
   0xc   :  { %478 = vmatpush3.bf16.msra.mxu0 %v475_v33 }
  0x90   :  { %v36_v8 = vpop.xlane.xlu0 %35  ;;  %v42_v9 = vpop.xlane.xlu1 %41 }
  0x91   :  { %v47_v10 = vmul.f32 0.03125, %v36_v8  ;;  %v49_v11 = vmul.f32 0.03125, %v42_v9  ;;  %v254_v8 = vld [vmem:[%s734_s5 + $0x18] sm:$0xff] }
  0x92   :  { %v483_v9 = vpack.c.bf16 %v254_v8, %v253_v7 }
  0x93   :  { %v51_v12 = vsub.f32 %v600_v0, %v47_v10  ;;  %v53_v13 = vsub.f32 %v605_v1, %v49_v11  ;;  %v255_v10 = vld [vmem:[%s734_s5 + $0x20] sm:$0xff]  ;;  %v256_v11 = vld [vmem:[%s734_s5 + $0x28] sm:$0xff] }
  0x94   :  { %v39_v14 = vpop.xlane.xlu0 %38  ;;  %v45_v15 = vpop.xlane.xlu1 %44  ;;  %484 = vmatprep.subr.bf16.mxu1 %v483_v9 }
  0x95   :  { %v48_v16 = vmul.f32 0.03125, %v39_v14  ;;  %v50_v17 = vmul.f32 0.03125, %v45_v15  ;;  %v55_v18 = vmul.f32 %v51_v12, %v51_v12  ;;  %v57_v19 = vmul.f32 %v53_v13, %v53_v13  ;;  %486 = vmatpush3.bf16.msra.mxu1 %v483_v9  ;;  %v258_v14 = vld [vmem:[%s734_s5 + $0x38] sm:$0xff] }
  0x97   :  { %v52_v20 = vsub.f32 %v610_v2, %v48_v16  ;;  %v54_v21 = vsub.f32 %v619_v5, %v50_v17  ;;  %v59_v22 = vsel %vm33_vm0, %v55_v18, 0.0  ;;  %v65_v23 = vsel %vm33_vm0, %v57_v19, 0.0  ;;  %v259_v16 = vld [vmem:[%s734_s5 + $0x40] sm:$0xff]  ;;  %v260_v17 = vld [vmem:[%s734_s5 + $0x48] sm:$0xff]  ;;  %v261_v18 = vld [vmem:[%s734_s5 + $0x50] sm:$0xff] }
  0x98   :  { %60 = vadd.xlane.f32.xlu0 %v59_v22  ;;  %v495_v19 = vpack.c.bf16 %v260_v17, %v259_v16  ;;  %v263_v22 = vld [vmem:[%s734_s5 + $0x60] sm:$0xff] }
  0x99   :  { %v56_v24 = vmul.f32 %v52_v20, %v52_v20  ;;  %v58_v25 = vmul.f32 %v54_v21, %v54_v21 }
  0x9b   :  { %v62_v26 = vsel %vm33_vm0, %v56_v24, 0.0  ;;  %v68_v27 = vsel %vm33_vm0, %v58_v25, 0.0  ;;  %v265_v25 = vld [vmem:[%s734_s5 + $0x70] sm:$0xff] }
  0x9c   :  { %66 = vadd.xlane.f32.xlu0 %v65_v23  ;;  %63 = vadd.xlane.f32.xlu1 %v62_v26  ;;  %v264_v23 = vld [vmem:[%s734_s5 + $0x68] sm:$0xff]  ;;  %v266_v26 = vld [vmem:[%s734_s5 + $0x78] sm:$0xff] }
  0x9d   :  { %v503_v24 = vpack.c.bf16 %v264_v23, %v263_v22 }
  0xa0   :  { %69 = vadd.xlane.f32.xlu1 %v68_v27  ;;  %v507_v27 = vpack.c.bf16 %v266_v26, %v265_v25 }
 0x125   :  { %v61_v37 = vpop.xlane.xlu0 %60 }
 0x126   :  { %v71_v38 = vmul.f32 0.03125, %v61_v37 }
 0x128   :  { %v75_v39 = vadd.f32 1e-05, %v71_v38 }
 0x129   :  { %v64_v40 = vpop.xlane.xlu1 %63  ;;  %v67_v41 = vpop.xlane.xlu0 %66 }
 0x12a   :  { %514 = vrsqrt.f32 %v75_v39  ;;  %v72_v42 = vmul.f32 0.03125, %v64_v40  ;;  %v73_v43 = vmul.f32 0.03125, %v67_v41 }
 0x12c   :  { %v76_v44 = vadd.f32 1e-05, %v72_v42  ;;  %v77_v45 = vadd.f32 1e-05, %v73_v43 }
 0x12d   :  { %v70_v46 = vpop.xlane.xlu1 %69 }
 0x12e   :  { %516 = vrsqrt.f32 %v76_v44  ;;  %v74_v47 = vmul.f32 0.03125, %v70_v46 }
 0x12f   :  { %518 = vrsqrt.f32 %v77_v45 }
 0x130   :  { %v78_v48 = vadd.f32 1e-05, %v74_v47 }
 0x132   :  { %520 = vrsqrt.f32 %v78_v48 }
 0x134   :  { %v515_v49 = vpop.eup %514 }
 0x135   :  { %v83_v51 = vmul.f32 %v515_v49, %v51_v12  ;;  %v487_v12 = vpack.c.bf16 %v256_v11, %v255_v10 }
 0x137   :  { %v93_v53 = vmul.f32 %v383_v50, %v83_v51  ;;  %488 = vmatprep.subr.bf16.mxu1 %v487_v12 }
 0x138   :  { %v517_v54 = vpop.eup %516  ;;  %490 = vmatpush3.bf16.msra.mxu1 %v487_v12 }
 0x139   :  { %v519_v55 = vpop.eup %518  ;;  %v103_v56 = vadd.f32 %v384_v52, %v93_v53  ;;  %v84_v57 = vmul.f32 %v517_v54, %v52_v20  ;;  %v262_v20 = vld [vmem:[%s734_s5 + $0x58] sm:$0xff] }
 0x13a   :  { %v85_v58 = vmul.f32 %v519_v55, %v53_v13  ;;  %v257_v13 = vld [vmem:[%s734_s5 + $0x30] sm:$0xff] }
 0x13b   :  { %427 = vmatprep.mubr.msk.f32.mxu0 %vm33_vm0, %v103_v56  ;;  %v94_v59 = vmul.f32 %v383_v50, %v84_v57  ;;  %v491_v15 = vpack.c.bf16 %v258_v14, %v257_v13  ;;  %v390_v13 = vld [vmem:[%s735_s6] ss:$0 sm:$0xff]  ;;  %s530_s6 = scalar_lea.vmem %s373_s25, 512 }
 0x13c   :  { %v521_v60 = vpop.eup %520  ;;  %v95_v61 = vmul.f32 %v383_v50, %v85_v58  ;;  %p531_p0 = scmp.ne.s32.totalorder %s373_s25, %s530_s6  ;;  %p536_p2 = scmp.lt.s32.totalorder %s530_s6, %s530_s6 }
 0x13d   :  { %v104_v62 = vadd.f32 %v384_v52, %v94_v59  ;;  %v86_v63 = vmul.f32 %v521_v60, %v54_v21  ;;  %492 = vmatprep.subr.bf16.mxu1 %v491_v15  ;;  %v499_v21 = vpack.c.bf16 %v262_v20, %v261_v18 }
 0x13e   :  { %v105_v3 = vadd.f32 %v384_v52, %v95_v61  ;;  %494 = vmatpush3.bf16.msra.mxu1 %v491_v15  ;;  %p537_p3 = por %p536_p2, %p535_p1 }
 0x13f   :  { %428 = vmatmul.mubr.msk.f32.vlgmr.msra.gmra.mrb[0].mxu0 %vm33_vm0, %v104_v62  ;;  %v96_v4 = vmul.f32 %v383_v50, %v86_v63  ;;  %496 = vmatprep.subr.bf16.mxu1 %v495_v19 }
 0x140   :  { %430 = vmatprep.mubr.msk.f32.mxu0 %vm33_vm0, %v105_v3  ;;  %p538_p4 = pnand %p537_p3, %p531_p0 }
 0x141   :  { %v106_v6 = vadd.f32 %v384_v52, %v96_v4 }
 0x142   :  { %498 = vmatpush3.bf16.msra.mxu1 %v495_v19 }
 0x143   :  { %431 = vmatmul.mubr.msk.f32.gmra.mrb[2].mxu0 %vm33_vm0, %v106_v6  ;;  %500 = vmatprep.subr.bf16.mxu1 %v499_v21 }
 0x146   :  { %502 = vmatpush3.bf16.msra.mxu1 %v499_v21 }
 0x147   :  { %504 = vmatprep.subr.bf16.mxu1 %v503_v24 }
 0x14a   :  { %506 = vmatpush3.bf16.msra.mxu1 %v503_v24 }
 0x14b   :  { %508 = vmatprep.subr.bf16.mxu1 %v507_v27 }
 0x14e   :  { %510 = vmatpush3.bf16.msra.mxu1 %v507_v27 }
 0x212   :  { %v429_v29 = vpop.f32.mrb[0].mxu0 }
 0x213   :  { %v202_v30 = vadd.f32 %v429_v29, %v385_v28  ;;  %v196_v31 = vpop.f32.mrb[1].mxu0 }
 0x214   :  { %v197_v32 = vadd.f32 %v385_v28, %v196_v31 }
 0x215   :  { %v220_v33 = vmul.f32 0.044715, %v202_v30  ;;  %v216_v62 = vmul.f32 0.5, %v202_v30 }
 0x216   :  { %v432_v34 = vpop.f32.mrb[2].mxu0  ;;  %v219_v35 = vmul.f32 0.044715, %v197_v32  ;;  %v215_v60 = vmul.f32 0.5, %v197_v32 }
 0x217   :  { %v224_v36 = vmul.f32 %v220_v33, %v202_v30  ;;  %v212_v37 = vadd.f32 %v432_v34, %v385_v28  ;;  %v206_v38 = vpop.f32.mrb[3].mxu0 }
 0x218   :  { %v207_v39 = vadd.f32 %v385_v28, %v206_v38  ;;  %v223_v40 = vmul.f32 %v219_v35, %v197_v32 }
 0x219   :  { %v222_v41 = vmul.f32 0.044715, %v212_v37  ;;  %v228_v42 = vmul.f32 %v224_v36, %v202_v30  ;;  %v218_v10 = vmul.f32 0.5, %v212_v37 }
 0x21a   :  { %v221_v43 = vmul.f32 0.044715, %v207_v39  ;;  %v227_v44 = vmul.f32 %v223_v40, %v197_v32  ;;  %v217_v8 = vmul.f32 0.5, %v207_v39 }
 0x21b   :  { %v226_v45 = vmul.f32 %v222_v41, %v212_v37  ;;  %v232_v46 = vadd.f32 %v228_v42, %v202_v30 }
 0x21c   :  { %v225_v47 = vmul.f32 %v221_v43, %v207_v39  ;;  %v231_v48 = vadd.f32 %v227_v44, %v197_v32 }
 0x21d   :  { %v236_v49 = vmul.f32 0.7978846, %v232_v46  ;;  %v230_v50 = vmul.f32 %v226_v45, %v212_v37 }
 0x21e   :  { %v235_v51 = vmul.f32 0.7978846, %v231_v48  ;;  %v229_v52 = vmul.f32 %v225_v47, %v207_v39 }
 0x21f   :  { %522 = vtanh.f32 %v236_v49  ;;  %v234_v53 = vadd.f32 %v230_v50, %v212_v37 }
 0x220   :  { %524 = vtanh.f32 %v235_v51  ;;  %v233_v54 = vadd.f32 %v229_v52, %v207_v39 }
 0x221   :  { %v238_v55 = vmul.f32 0.7978846, %v234_v53 }
 0x222   :  { %v237_v56 = vmul.f32 0.7978846, %v233_v54 }
 0x223   :  { %526 = vtanh.f32 %v238_v55 }
 0x224   :  { %528 = vtanh.f32 %v237_v56 }
 0x229   :  { %v523_v57 = vpop.eup %522 }
 0x22a   :  { %v525_v58 = vpop.eup %524  ;;  %v244_v59 = vadd.f32 1.0, %v523_v57 }
 0x22b   :  { %v243_v61 = vadd.f32 1.0, %v525_v58 }
 0x22c   :  { %v248_v6 = vmul.f32 %v244_v59, %v216_v62 }
 0x22d   :  { %v527_v63 = vpop.eup %526  ;;  %v247_v3 = vmul.f32 %v243_v61, %v215_v60 }
 0x22e   :  { %v529_v4 = vpop.eup %528  ;;  %v246_v7 = vadd.f32 1.0, %v527_v63 }
 0x22f   :  { %465 = vmatprep.mubr.f32.mxu1 %v247_v3  ;;  %v245_v9 = vadd.f32 1.0, %v529_v4 }
 0x230   :  { %466 = vmatmul.mubr.f32.vlgmr.msra.gmra.mrb[0].mxu1 %v248_v6  ;;  %v250_v12 = vmul.f32 %v246_v7, %v218_v10 }
 0x231   :  { %v249_v11 = vmul.f32 %v245_v9, %v217_v8 }
 0x233   :  { %468 = vmatprep.mubr.f32.mxu1 %v249_v11 }
 0x234   :  { %469 = vmatmul.mubr.f32.gmra.mrb[2].mxu1 %v250_v12 }
 0x303   :  { %v467_v14 = vpop.f32.mrb[0].mxu1 }
 0x304   :  { %v346_v15 = vadd.f32 %v467_v14, %v390_v13  ;;  %v340_v16 = vpop.f32.mrb[1].mxu1 }
 0x305   :  { %v341_v17 = vadd.f32 %v390_v13, %v340_v16 }
 0x306   :  { %v360_v18 = vadd.f32 %v346_v15, %v610_v2 }
 0x307   :  { %v359_v19 = vadd.f32 %v341_v17, %v600_v0  ;;  %v470_v20 = vpop.f32.mrb[2].mxu1 }
 0x308   :  { %364 = vst.msk [vmem:[#allocation2 + $0x8] sm:$0xff] %vm33_vm0, %v360_v18  ;;  %v356_v21 = vadd.f32 %v470_v20, %v390_v13  ;;  %v350_v22 = vpop.f32.mrb[3].mxu1 }
 0x309   :  { %363 = vst.msk [vmem:[#allocation2] sm:$0xff] %vm33_vm0, %v359_v19  ;;  %v351_v23 = vadd.f32 %v390_v13, %v350_v22 }
 0x30a   :  { %v362_v24 = vadd.f32 %v356_v21, %v619_v5 }
 0x30b   :  { %v361_v25 = vadd.f32 %v351_v23, %v605_v1 }
 0x30c   :  { %366 = vst.msk [vmem:[#allocation2 + $0x18] sm:$0xff] %vm33_vm0, %v362_v24 }
 0x30d   :  { %365 = vst.msk [vmem:[#allocation2 + $0x10] sm:$0xff] %vm33_vm0, %v361_v25 }
 0x30e   :  { %541 = shalt.err (!%p538_p4)
}
 0x30f   :  { %s542_s28 = scalar_lea.hbm %s736_s7, 512 }
 0x310   :  { %p543_p5 = scmp.ne.s32.totalorder %s736_s7, %s542_s28  ;;  %p546_p6 = scmp.lt.u32.totalorder %s542_s28, %s736_s7 }
 0x312   :  { %p548_p7 = pnand %p546_p6, %p543_p5 }
 0x314   :  { %551 = shalt.err (!%p548_p7)
}
 0x315   :  { %s555_s9 = smov 128   ;;  %s556_s10 = smov 8  }
 0x316   :  { %378 = dma.vmem_to_hbm [thread:$0]  %s373_s25, 512, %s736_s7, [#allocation3], %s555_s9, %s555_s9, %s556_s10  }
 0x317   :  { %552 = dma.done.wait [#allocation3], 512  }
 0x318   :  { %553 = vsyncadd [#allocation3], 4294966784 }
 0x319   :  { %382 = vsyncpa [#allocation3], 1 }

</bundles_post_ra>
